<compile_context>
chip_gen: v7x
topology: tpu7x:2x2x1
jax: 0.10.0
libtpu: 0.0.40
codegen_flags: <defaults>
</compile_context>

<pallas_src>
import functools

import jax
import jax.numpy as jnp
from jax.experimental import pallas as pl
from jax.experimental.pallas import tpu as pltpu


# ------------------------------------------------------------------
# Generation-aware sizing helpers
# ------------------------------------------------------------------
@functools.lru_cache(maxsize=None)
def _vmem_budget_bytes():
    """~75% of physical VMEM: ~96 MiB on v5e/v6e (128 MiB), ~48 MiB on v7x (64 MiB)."""
    phys = 64 * 1024 * 1024
    try:
        phys = int(pltpu.get_tpu_info().vmem_capacity_bytes)
    except Exception:
        pass
    return max(min(phys * 3 // 4, 112 * 1024 * 1024), 16 * 1024 * 1024)


@functools.lru_cache(maxsize=None)
def _num_tensorcores():
    """2 TensorCores per chip on v7x (megacore), 1 on v5e/v6e."""
    try:
        kind = jax.devices()[0].device_kind.lower()
    except Exception:
        return 1
    return 2 if "v7" in kind else 1


def _pick_batch_blocks(B, requested=None):
    def ok(nb):
        return nb >= 1 and B % nb == 0 and (nb == 1 or (B // nb) % 8 == 0)
    if requested is not None:
        return requested if ok(requested) else 1
    nb = _num_tensorcores()                 # shard batch across TCs on v7x
    if not ok(nb):
        nb = 1
    # keep bb <= 64 so the unrolled step stays register-resident (no spills)
    while B // nb > 64 and ok(nb * 2):
        nb *= 2
    return nb


def _pick_time_chunk(T, bb, D, H, w_bytes, time_chunk):
    """Largest chunk <= time_chunk whose per-chunk working set fits the VMEM budget."""
    budget = _vmem_budget_bytes()
    # loop-invariant: double-buffered weights + biases + hidden-state carry
    fixed = 2 * (3 * D * H + 2 * H * H) * w_bytes + 2 * 3 * H * 4 + bb * H * 4
    # per chunk-timestep: double-buffered x tile + out tile + 3 gate-scratch rows
    per_t = bb * (2 * D * 4 + 2 * H * 4 + 3 * H * 4)
    tc = max(1, min(time_chunk, T))
    avail = budget - fixed
    if avail < per_t * tc:
        tc = max(1, int(avail // per_t)) if avail >= per_t else 1
    return int(tc)


# ------------------------------------------------------------------
# Pallas kernels
# ------------------------------------------------------------------
def matmul_bias_kernel(x_ref, w_ref, b_ref, out_ref, *, compute_dtype):
    acc = jnp.dot(x_ref[...].astype(compute_dtype),
                  w_ref[...].astype(compute_dtype),
                  preferred_element_type=jnp.float32)
    out_ref[...] = (acc + b_ref[...].astype(jnp.float32)).astype(out_ref.dtype)


def nbrc_recurrent_kernel(x_ref, uw_ref, ub_ref, wac_ref, out_ref,
                          xa_ref, xc_ref, xu_ref, h_ref,
                          *, hidden, time_chunk, compute_dtype):
    """One chunk of `time_chunk` timesteps of one nBRC layer.

    x_ref   : (tc, bb, D)   raw layer input tile (previous layer / model input)
    uw_ref  : (3, D, H)     stacked [Ua, Uc, U] weights (compute_dtype)
    ub_ref  : (3, 1, H)     per-gate biases, Wa/Wc biases already folded in (f32)
    wac_ref : (H, 2H)       fused [Wa | Wc] weight (compute_dtype)
    out_ref : (tc, bb, H)
    x*_ref  : (tc, bb, H)   per-gate x-projection scratch (f32, VMEM)
    h_ref   : (bb, H)       hidden-state carry (f32, VMEM)
    """
    t_blk = pl.program_id(1)

    @pl.when(t_blk == 0)
    def _():
        h_ref[...] = jnp.zeros_like(h_ref)

    H = hidden
    tc = time_chunk
    bb = x_ref.shape[1]

    # ---- chunk-level x projections (off the sequential critical path) ------
    # One (tc*bb, D) @ (D, H) MXU dot per gate; results land lane-dense in
    # per-gate scratch so per-step reads below are leading-axis indexed.
    x2d = x_ref[...].reshape(tc * bb, -1).astype(compute_dtype)
    for gate_ref, g in ((xa_ref, 0), (xc_ref, 1), (xu_ref, 2)):
        proj = jnp.dot(x2d, uw_ref[g], preferred_element_type=jnp.float32)
        gate_ref[...] = (proj + ub_ref[g].astype(jnp.float32)).reshape(tc, bb, H)

    # ---- sequential recurrence: ONE fused h @ [Wa|Wc] dot per timestep -----
    w_ac = wac_ref[...]

    def step(i, h):
        hz = jnp.dot(h.astype(compute_dtype), w_ac,
                     preferred_element_type=jnp.float32)
        # hz[:, :H] / hz[:, H:] are free static views when H % 128 == 0.
        a = 1.0 + jnp.tanh(xa_ref[i] + hz[:, :H])
        c = jax.nn.sigmoid(xc_ref[i] + hz[:, H:])
        h_new = c * h + (1.0 - c) * jnp.tanh(xu_ref[i] + a * h)
        out_ref[i] = h_new.astype(out_ref.dtype)
        return h_new

    h_ref[...] = jax.lax.fori_loop(0, tc, step, h_ref[...], unroll=True)


# ------------------------------------------------------------------
# Wrappers
# ------------------------------------------------------------------
def matmul_bias(x, w, b, *, out_dtype=None, compute_dtype=jnp.bfloat16,
                block_m=512, block_n=1024):
    """x: (M, K), w: (K, N), b: (1, N) -> (M, N). Tiled over M and N."""
    M, K = x.shape
    N = w.shape[1]
    out_dtype = out_dtype or x.dtype
    bm = M if M <= block_m else block_m          # 512 % 8 == 0
    bn = N if N <= block_n else block_n          # 1024 % 128 == 0
    # TODO(synk): add K tiling with an accumulator for very large K.
    kernel = functools.partial(matmul_bias_kernel, compute_dtype=compute_dtype)
    return pl.pallas_call(
        kernel,
        out_shape=jax.ShapeDtypeStruct((M, N), out_dtype),
        grid_spec=pltpu.PrefetchScalarGridSpec(
            num_scalar_prefetch=0,
            grid=(pl.cdiv(M, bm), pl.cdiv(N, bn)),
            in_specs=[pl.BlockSpec((bm, K), lambda i, j: (i, 0)),
                      pl.BlockSpec((K, bn), lambda i, j: (0, j)),
                      pl.BlockSpec((1, bn), lambda i, j: (0, j))],
            out_specs=pl.BlockSpec((bm, bn), lambda i, j: (i, j)),
        ),
        compiler_params=pltpu.CompilerParams(
            dimension_semantics=("parallel", "parallel"),
            vmem_limit_bytes=_vmem_budget_bytes()),
    )(x, w, b)


def fuse_layer_params(params, compute_dtype):
    """Original 10-tuple -> (u_w_all (3,D,H), u_b_all (3,1,H), w_ac (H,2H))."""
    ua_w, ua_b, wa_w, wa_b, uc_w, uc_b, wc_w, wc_b, u_w, u_b = params
    u_w_all = jnp.stack([ua_w, uc_w, u_w], axis=0).astype(compute_dtype)
    # fold the h-projection biases into the x-projection biases (exact)
    u_b_all = jnp.stack([ua_b + wa_b, uc_b + wc_b, u_b], axis=0)  # f32
    w_ac = jnp.concatenate([wa_w, wc_w], axis=1).astype(compute_dtype)
    return u_w_all, u_b_all, w_ac


def nbrc_layer(x_tbd, fused_params, hidden_dims, *, time_chunk=16,
               batch_blocks=None, compute_dtype=jnp.bfloat16):
    """x_tbd: (T, B, D) time-major -> (T, B, H) time-major."""
    u_w_all, u_b_all, w_ac = fused_params
    T, B, D = x_tbd.shape
    H = hidden_dims

    nb = _pick_batch_blocks(B, batch_blocks)
    bb = B // nb
    w_bytes = jnp.dtype(compute_dtype).itemsize
    tc = _pick_time_chunk(T, bb, D, H, w_bytes, time_chunk)

    # pad T to a multiple of tc (zero pad; padded outputs sliced off below)
    Tp = -(-T // tc) * tc
    xin = x_tbd if Tp == T else jnp.pad(x_tbd, ((0, Tp - T), (0, 0), (0, 0)))

    kernel = functools.partial(nbrc_recurrent_kernel, hidden=H, time_chunk=tc,
                               compute_dtype=compute_dtype)
    out = pl.pallas_call(
        kernel,
        out_shape=jax.ShapeDtypeStruct((Tp, B, H), x_tbd.dtype),
        grid_spec=pltpu.PrefetchScalarGridSpec(
            num_scalar_prefetch=0,
            grid=(nb, Tp // tc),
            in_specs=[
                pl.BlockSpec((tc, bb, D), lambda b, t: (t, b, 0)),
                pl.BlockSpec((3, D, H), lambda b, t: (0, 0, 0)),
                pl.BlockSpec((3, 1, H), lambda b, t: (0, 0, 0)),
                pl.BlockSpec((H, 2 * H), lambda b, t: (0, 0)),
            ],
            out_specs=pl.BlockSpec((tc, bb, H), lambda b, t: (t, b, 0)),
            scratch_shapes=[pltpu.VMEM((tc, bb, H), jnp.float32)] * 3
                         + [pltpu.VMEM((bb, H), jnp.float32)],
        ),
        compiler_params=pltpu.CompilerParams(
            # batch axis shardable across TCs (v7x); T axis is a true recurrence
            dimension_semantics=("parallel", "arbitrary"),
            vmem_limit_bytes=_vmem_budget_bytes()),
    )(xin, u_w_all, u_b_all, w_ac)
    return out[:T] if Tp != T else out


def nbrc_model_forward(x, layer_params, fc_w, fc_b, hidden_dims, full=True,
                       time_chunk=16, batch_blocks=None,
                       compute_dtype=jnp.bfloat16):
    """x: (B, T, input_dims) -> (B, T, output_dims) if full else (B, output_dims)."""
    B, T, _ = x.shape
    cur = jnp.transpose(x, (1, 0, 2))            # time-major once at model entry
    for params in layer_params:
        cur = nbrc_layer(cur, fuse_layer_params(params, compute_dtype),
                         hidden_dims, time_chunk=time_chunk,
                         batch_blocks=batch_blocks, compute_dtype=compute_dtype)
    if full:
        out = matmul_bias(cur.reshape(T * B, hidden_dims), fc_w, fc_b,
                          compute_dtype=compute_dtype)
        return jnp.transpose(out.reshape(T, B, -1), (1, 0, 2))
    else:
        return matmul_bias(cur[-1], fc_w, fc_b, compute_dtype=compute_dtype)


# ------------------------------------------------------------------
# Deterministic parameter init (PyTorch nn.Linear default: U(-1/sqrt(fan_in), +))
# Weights stored pre-transposed as (fan_in, fan_out); biases as (1, fan_out).
# ------------------------------------------------------------------
def init_linear(key, fan_in, fan_out):
    kw, kb = jax.random.split(key)
    bound = 1.0 / float(fan_in) ** 0.5
    w = jax.random.uniform(kw, (fan_in, fan_out), jnp.float32, -bound, bound)
    b = jax.random.uniform(kb, (1, fan_out), jnp.float32, -bound, bound)
    return w, b


def init_nbrc_model(key, input_dims, hidden_dims, output_dims, num_layers):
    layer_params = []
    for i in range(num_layers):
        d_in = input_dims if i == 0 else hidden_dims
        keys = jax.random.split(key, 6)
        key = keys[0]
        ua_w, ua_b = init_linear(keys[1], d_in, hidden_dims)
        wa_w, wa_b = init_linear(keys[2], hidden_dims, hidden_dims)
        uc_w, uc_b = init_linear(keys[3], d_in, hidden_dims)
        wc_w, wc_b = init_linear(keys[4], hidden_dims, hidden_dims)
        u_w, u_b = init_linear(keys[5], d_in, hidden_dims)
        layer_params.append((ua_w, ua_b, wa_w, wa_b,
                             uc_w, uc_b, wc_w, wc_b,
                             u_w, u_b))
    kfc, _ = jax.random.split(key)
    fc_w, fc_b = init_linear(kfc, hidden_dims, output_dims)
    return layer_params, fc_w, fc_b


# ------------------------------------------------------------------
# Pure-JAX reference (mirrors the PyTorch forward exactly)
# ------------------------------------------------------------------
def nbrc_model_ref(x, layer_params, fc_w, fc_b, hidden_dims, full=True):
    B, T, _ = x.shape
    cur = x
    for (ua_w, ua_b, wa_w, wa_b, uc_w, uc_b, wc_w, wc_b, u_w, u_b) in layer_params:
        h = jnp.zeros((B, hidden_dims), jnp.float32)
        outs = []
        for t in range(T):
            xt = cur[:, t, :]
            a = 1.0 + jnp.tanh(xt @ ua_w + ua_b + h @ wa_w + wa_b)
            c = jax.nn.sigmoid(xt @ uc_w + uc_b + h @ wc_w + wc_b)
            h = c * h + (1.0 - c) * jnp.tanh(xt @ u_w + u_b + a * h)
            outs.append(h[:, None, :])
        cur = jnp.concatenate(outs, axis=1)
    y = cur @ fc_w + fc_b
    return y if full else y[:, -1, :]


# ------------------------------------------------------------------
if __name__ == "__main__":
    B, T = 2, 8
    input_dims, hidden_dims, output_dims, num_layers = 4, 32, 8, 2

    key = jax.random.PRNGKey(0)
    kx, kp = jax.random.split(key)
    x = jax.random.normal(kx, (B, T, input_dims), jnp.float32)

    layer_params, fc_w, fc_b = init_nbrc_model(
        kp, input_dims, hidden_dims, output_dims, num_layers)

    ref_full = nbrc_model_ref(x, layer_params, fc_w, fc_b, hidden_dims, full=True)
    ref_last = nbrc_model_ref(x, layer_params, fc_w, fc_b, hidden_dims, full=False)

    # exact-precision path (f32 MXU operands) — matches reference tightly
    fwd_f32 = jax.jit(functools.partial(
        nbrc_model_forward, hidden_dims=hidden_dims, full=True,
        compute_dtype=jnp.float32))
    out_f32 = jax.block_until_ready(fwd_f32(x, layer_params, fc_w, fc_b))
    assert out_f32.shape == (B, T, output_dims), out_f32.shape
    assert jnp.allclose(out_f32, ref_full, atol=1e-4, rtol=1e-4), \
        float(jnp.max(jnp.abs(out_f32 - ref_full)))

    # last-timestep output (full=False path), exact precision
    fwd_last = jax.jit(functools.partial(
        nbrc_model_forward, hidden_dims=hidden_dims, full=False,
        compute_dtype=jnp.float32))
    out_last = jax.block_until_ready(fwd_last(x, layer_params, fc_w, fc_b))
    assert out_last.shape == (B, output_dims), out_last.shape
    assert jnp.allclose(out_last, ref_last, atol=1e-4, rtol=1e-4), \
        float(jnp.max(jnp.abs(out_last - ref_last)))

    # default performance path: bf16 MXU operands, f32 accumulate + elementwise
    fwd_bf16 = jax.jit(functools.partial(
        nbrc_model_forward, hidden_dims=hidden_dims, full=True))
    out_bf16 = jax.block_until_ready(fwd_bf16(x, layer_params, fc_w, fc_b))
    assert out_bf16.shape == (B, T, output_dims), out_bf16.shape
    assert jnp.allclose(out_bf16, ref_full, atol=5e-2, rtol=5e-2), \
        float(jnp.max(jnp.abs(out_bf16 - ref_full)))

    print("KERNEL_OK")
</pallas_src>

<mosaic_0001>
module attributes {stable_mosaic.version = 11 : i64} {
  func.func @matmul_bias_kernel(%arg0: i32, %arg1: i32, %arg2: memref<16x32xf32, #tpu.memory_space<vmem>>, %arg3: memref<32x8xf32, #tpu.memory_space<vmem>>, %arg4: memref<1x8xf32, #tpu.memory_space<vmem>>, %arg5: memref<16x8xf32, #tpu.memory_space<vmem>>) attributes {dimension_semantics = [#tpu.dimension_semantics<parallel>, #tpu.dimension_semantics<parallel>], iteration_bounds = array<i64: 1, 1>, scalar_prefetch = 0 : i64, scratch_operands = 0 : i64, tpu.core_type = #tpu.core_type<tc>, window_params = [{transform_indices = @transform_0, window_bounds = array<i64: 16, 32>}, {transform_indices = @transform_1, window_bounds = array<i64: 32, 8>}, {transform_indices = @transform_2, window_bounds = array<i64: 1, 8>}, {transform_indices = @transform_3, window_bounds = array<i64: 16, 8>}]} {
    %c0 = arith.constant 0 : index
    %c0_0 = arith.constant 0 : index
    %0 = vector.load %arg2[%c0, %c0_0] : memref<16x32xf32, #tpu.memory_space<vmem>>, vector<16x32xf32>
    %c0_1 = arith.constant 0 : index
    %c0_2 = arith.constant 0 : index
    %1 = vector.load %arg3[%c0_1, %c0_2] : memref<32x8xf32, #tpu.memory_space<vmem>>, vector<32x8xf32>
    %cst = arith.constant dense<0.000000e+00> : vector<16x8xf32>
    %2 = tpu.matmul %0, %1, %cst {dimension_numbers = #tpu.dot_dimension_numbers<[1], [0], [0], [1], [0, 0, 1, 1], [], []>} : vector<16x32xf32>, vector<32x8xf32>, vector<16x8xf32> -> vector<16x8xf32>
    %c0_3 = arith.constant 0 : index
    %c0_4 = arith.constant 0 : index
    %3 = vector.load %arg4[%c0_3, %c0_4] : memref<1x8xf32, #tpu.memory_space<vmem>>, vector<1x8xf32>
    %4 = vector.broadcast %3 : vector<1x8xf32> to vector<16x8xf32>
    %5 = arith.addf %2, %4 : vector<16x8xf32>
    %c0_5 = arith.constant 0 : index
    %c0_6 = arith.constant 0 : index
    %6 = vector.load %arg5[%c0_5, %c0_6] : memref<16x8xf32, #tpu.memory_space<vmem>>, vector<16x8xf32>
    tpu.vector_store %arg5[%c0_5, %c0_6], %5 {strides = array<i32>} : memref<16x8xf32, #tpu.memory_space<vmem>>, vector<16x8xf32>,
    return
  }
  func.func @transform_0(%arg0: i32, %arg1: i32) -> (i32, i32) {
    %c0_i32 = arith.constant 0 : i32
    %c0_i32_0 = arith.constant 0 : i32
    return %arg0, %c0_i32 : i32, i32
  }
  func.func @transform_1(%arg0: i32, %arg1: i32) -> (i32, i32) {
    %c0_i32 = arith.constant 0 : i32
    %c0_i32_0 = arith.constant 0 : i32
    return %c0_i32, %arg1 : i32, i32
  }
  func.func @transform_2(%arg0: i32, %arg1: i32) -> (i32, i32) {
    %c0_i32 = arith.constant 0 : i32
    %c0_i32_0 = arith.constant 0 : i32
    return %c0_i32, %arg1 : i32, i32
  }
  func.func @transform_3(%arg0: i32, %arg1: i32) -> (i32, i32) {
    %c0_i32 = arith.constant 0 : i32
    return %arg0, %arg1 : i32, i32
  }
}

module attributes {stable_mosaic.version = 11 : i64} {
  func.func @nbrc_recurrent_kernel(%arg0: i32, %arg1: i32, %arg2: memref<8x2x4xf32, #tpu.memory_space<vmem>>, %arg3: memref<3x4x32xf32, #tpu.memory_space<vmem>>, %arg4: memref<3x1x32xf32, #tpu.memory_space<vmem>>, %arg5: memref<32x64xf32, #tpu.memory_space<vmem>>, %arg6: memref<8x2x32xf32, #tpu.memory_space<vmem>>, %arg7: memref<8x2x32xf32, #tpu.memory_space<vmem>>, %arg8: memref<8x2x32xf32, #tpu.memory_space<vmem>>, %arg9: memref<8x2x32xf32, #tpu.memory_space<vmem>>, %arg10: memref<2x32xf32, #tpu.memory_space<vmem>>) attributes {dimension_semantics = [#tpu.dimension_semantics<parallel>, #tpu.dimension_semantics<arbitrary>], iteration_bounds = array<i64: 1, 1>, scalar_prefetch = 0 : i64, scratch_operands = 4 : i64, tpu.core_type = #tpu.core_type<tc>, window_params = [{transform_indices = @transform_0, window_bounds = array<i64: 8, 2, 4>}, {pipeline_mode = #tpu.pipeline_mode<synchronous>, transform_indices = @transform_1, window_bounds = array<i64: 3, 4, 32>}, {pipeline_mode = #tpu.pipeline_mode<synchronous>, transform_indices = @transform_2, window_bounds = array<i64: 3, 1, 32>}, {pipeline_mode = #tpu.pipeline_mode<synchronous>, transform_indices = @transform_3, window_bounds = array<i64: 32, 64>}, {transform_indices = @transform_4, window_bounds = array<i64: 8, 2, 32>}]} {
    %c0_i32 = arith.constant 0 : i32
    %0 = arith.cmpi eq, %arg1, %c0_i32 : i32
    %1 = arith.extui %0 : i1 to i32
    %c0_i32_0 = arith.constant 0 : i32
    %2 = arith.cmpi ne, %1, %c0_i32_0 : i32
    scf.if %2 {
      %cst_133 = arith.constant 0.000000e+00 : f32
      %307 = vector.broadcast %cst_133 : f32 to vector<2x32xf32>
      %c0_134 = arith.constant 0 : index
      %c0_135 = arith.constant 0 : index
      %308 = vector.load %arg10[%c0_134, %c0_135] : memref<2x32xf32, #tpu.memory_space<vmem>>, vector<2x32xf32>
      tpu.vector_store %arg10[%c0_134, %c0_135], %307 {strides = array<i32>} : memref<2x32xf32, #tpu.memory_space<vmem>>, vector<2x32xf32>,
    } else {
    }
    %c0 = arith.constant 0 : index
    %c0_1 = arith.constant 0 : index
    %c0_2 = arith.constant 0 : index
    %3 = vector.load %arg2[%c0, %c0_1, %c0_2] : memref<8x2x4xf32, #tpu.memory_space<vmem>>, vector<8x2x4xf32>
    %4 = vector.shape_cast %3 : vector<8x2x4xf32> to vector<16x4xf32>
    %c0_3 = arith.constant 0 : index
    %c0_4 = arith.constant 0 : index
    %c0_5 = arith.constant 0 : index
    %5 = vector.load %arg3[%c0_3, %c0_4, %c0_5] : memref<3x4x32xf32, #tpu.memory_space<vmem>>, vector<1x4x32xf32>
    %6 = vector.shape_cast %5 : vector<1x4x32xf32> to vector<4x32xf32>
    %cst = arith.constant dense<0.000000e+00> : vector<16x32xf32>
    %7 = tpu.matmul %4, %6, %cst {dimension_numbers = #tpu.dot_dimension_numbers<[1], [0], [0], [1], [0, 0, 1, 1], [], []>} : vector<16x4xf32>, vector<4x32xf32>, vector<16x32xf32> -> vector<16x32xf32>
    %c0_6 = arith.constant 0 : index
    %c0_7 = arith.constant 0 : index
    %c0_8 = arith.constant 0 : index
    %8 = vector.load %arg4[%c0_6, %c0_7, %c0_8] : memref<3x1x32xf32, #tpu.memory_space<vmem>>, vector<1x1x32xf32>
    %9 = vector.shape_cast %8 : vector<1x1x32xf32> to vector<1x32xf32>
    %10 = vector.broadcast %9 : vector<1x32xf32> to vector<16x32xf32>
    %11 = arith.addf %7, %10 : vector<16x32xf32>
    %12 = vector.shape_cast %11 : vector<16x32xf32> to vector<8x2x32xf32>
    %c0_9 = arith.constant 0 : index
    %c0_10 = arith.constant 0 : index
    %c0_11 = arith.constant 0 : index
    %13 = vector.load %arg7[%c0_9, %c0_10, %c0_11] : memref<8x2x32xf32, #tpu.memory_space<vmem>>, vector<8x2x32xf32>
    tpu.vector_store %arg7[%c0_9, %c0_10, %c0_11], %12 {strides = array<i32>} : memref<8x2x32xf32, #tpu.memory_space<vmem>>, vector<8x2x32xf32>,
    %c1 = arith.constant 1 : index
    %c0_12 = arith.constant 0 : index
    %c0_13 = arith.constant 0 : index
    %14 = vector.load %arg3[%c1, %c0_12, %c0_13] : memref<3x4x32xf32, #tpu.memory_space<vmem>>, vector<1x4x32xf32>
    %15 = vector.shape_cast %14 : vector<1x4x32xf32> to vector<4x32xf32>
    %cst_14 = arith.constant dense<0.000000e+00> : vector<16x32xf32>
    %16 = tpu.matmul %4, %15, %cst_14 {dimension_numbers = #tpu.dot_dimension_numbers<[1], [0], [0], [1], [0, 0, 1, 1], [], []>} : vector<16x4xf32>, vector<4x32xf32>, vector<16x32xf32> -> vector<16x32xf32>
    %c1_15 = arith.constant 1 : index
    %c0_16 = arith.constant 0 : index
    %c0_17 = arith.constant 0 : index
    %17 = vector.load %arg4[%c1_15, %c0_16, %c0_17] : memref<3x1x32xf32, #tpu.memory_space<vmem>>, vector<1x1x32xf32>
    %18 = vector.shape_cast %17 : vector<1x1x32xf32> to vector<1x32xf32>
    %19 = vector.broadcast %18 : vector<1x32xf32> to vector<16x32xf32>
    %20 = arith.addf %16, %19 : vector<16x32xf32>
    %21 = vector.shape_cast %20 : vector<16x32xf32> to vector<8x2x32xf32>
    %c0_18 = arith.constant 0 : index
    %c0_19 = arith.constant 0 : index
    %c0_20 = arith.constant 0 : index
    %22 = vector.load %arg8[%c0_18, %c0_19, %c0_20] : memref<8x2x32xf32, #tpu.memory_space<vmem>>, vector<8x2x32xf32>
    tpu.vector_store %arg8[%c0_18, %c0_19, %c0_20], %21 {strides = array<i32>} : memref<8x2x32xf32, #tpu.memory_space<vmem>>, vector<8x2x32xf32>,
    %c2 = arith.constant 2 : index
    %c0_21 = arith.constant 0 : index
    %c0_22 = arith.constant 0 : index
    %23 = vector.load %arg3[%c2, %c0_21, %c0_22] : memref<3x4x32xf32, #tpu.memory_space<vmem>>, vector<1x4x32xf32>
    %24 = vector.shape_cast %23 : vector<1x4x32xf32> to vector<4x32xf32>
    %cst_23 = arith.constant dense<0.000000e+00> : vector<16x32xf32>
    %25 = tpu.matmul %4, %24, %cst_23 {dimension_numbers = #tpu.dot_dimension_numbers<[1], [0], [0], [1], [0, 0, 1, 1], [], []>} : vector<16x4xf32>, vector<4x32xf32>, vector<16x32xf32> -> vector<16x32xf32>
    %c2_24 = arith.constant 2 : index
    %c0_25 = arith.constant 0 : index
    %c0_26 = arith.constant 0 : index
    %26 = vector.load %arg4[%c2_24, %c0_25, %c0_26] : memref<3x1x32xf32, #tpu.memory_space<vmem>>, vector<1x1x32xf32>
    %27 = vector.shape_cast %26 : vector<1x1x32xf32> to vector<1x32xf32>
    %28 = vector.broadcast %27 : vector<1x32xf32> to vector<16x32xf32>
    %29 = arith.addf %25, %28 : vector<16x32xf32>
    %30 = vector.shape_cast %29 : vector<16x32xf32> to vector<8x2x32xf32>
    %c0_27 = arith.constant 0 : index
    %c0_28 = arith.constant 0 : index
    %c0_29 = arith.constant 0 : index
    %31 = vector.load %arg9[%c0_27, %c0_28, %c0_29] : memref<8x2x32xf32, #tpu.memory_space<vmem>>, vector<8x2x32xf32>
    tpu.vector_store %arg9[%c0_27, %c0_28, %c0_29], %30 {strides = array<i32>} : memref<8x2x32xf32, #tpu.memory_space<vmem>>, vector<8x2x32xf32>,
    %c0_30 = arith.constant 0 : index
    %c0_31 = arith.constant 0 : index
    %32 = vector.load %arg5[%c0_30, %c0_31] : memref<32x64xf32, #tpu.memory_space<vmem>>, vector<32x64xf32>
    %c0_32 = arith.constant 0 : index
    %c0_33 = arith.constant 0 : index
    %33 = vector.load %arg10[%c0_32, %c0_33] : memref<2x32xf32, #tpu.memory_space<vmem>>, vector<2x32xf32>
    %c0_i32_34 = arith.constant 0 : i32
    %cst_35 = arith.constant dense<0.000000e+00> : vector<2x64xf32>
    %34 = tpu.matmul %33, %32, %cst_35 {dimension_numbers = #tpu.dot_dimension_numbers<[1], [0], [0], [1], [0, 0, 1, 1], [], []>} : vector<2x32xf32>, vector<32x64xf32>, vector<2x64xf32> -> vector<2x64xf32>
    %35 = arith.index_cast %c0_i32_34 : i32 to index
    %c0_36 = arith.constant 0 : index
    %c0_37 = arith.constant 0 : index
    %36 = vector.load %arg7[%35, %c0_36, %c0_37] : memref<8x2x32xf32, #tpu.memory_space<vmem>>, vector<1x2x32xf32>
    %37 = vector.shape_cast %36 : vector<1x2x32xf32> to vector<2x32xf32>
    %38 = vector.extract_strided_slice %34 {offsets = [0, 0], sizes = [2, 32], strides = [1, 1]} : vector<2x64xf32> to vector<2x32xf32>
    %39 = arith.addf %37, %38 : vector<2x32xf32>
    %40 = math.tanh %39 : vector<2x32xf32>
    %cst_38 = arith.constant 1.000000e+00 : f32
    %41 = vector.broadcast %cst_38 : f32 to vector<2x32xf32>
    %42 = arith.addf %41, %40 : vector<2x32xf32>
    %43 = arith.index_cast %c0_i32_34 : i32 to index
    %c0_39 = arith.constant 0 : index
    %c0_40 = arith.constant 0 : index
    %44 = vector.load %arg8[%43, %c0_39, %c0_40] : memref<8x2x32xf32, #tpu.memory_space<vmem>>, vector<1x2x32xf32>
    %45 = vector.shape_cast %44 : vector<1x2x32xf32> to vector<2x32xf32>
    %46 = vector.extract_strided_slice %34 {offsets = [0, 32], sizes = [2, 32], strides = [1, 1]} : vector<2x64xf32> to vector<2x32xf32>
    %47 = arith.addf %45, %46 : vector<2x32xf32>
    %48 = arith.negf %47 : vector<2x32xf32>
    %49 = math.exp %48 : vector<2x32xf32>
    %cst_41 = arith.constant 1.000000e+00 : f32
    %50 = vector.broadcast %cst_41 : f32 to vector<2x32xf32>
    %51 = arith.addf %50, %49 : vector<2x32xf32>
    %52 = arith.divf %50, %51 : vector<2x32xf32>
    %53 = arith.mulf %52, %33 : vector<2x32xf32>
    %cst_42 = arith.constant 1.000000e+00 : f32
    %54 = vector.broadcast %cst_42 : f32 to vector<2x32xf32>
    %55 = arith.subf %54, %52 : vector<2x32xf32>
    %56 = arith.index_cast %c0_i32_34 : i32 to index
    %c0_43 = arith.constant 0 : index
    %c0_44 = arith.constant 0 : index
    %57 = vector.load %arg9[%56, %c0_43, %c0_44] : memref<8x2x32xf32, #tpu.memory_space<vmem>>, vector<1x2x32xf32>
    %58 = vector.shape_cast %57 : vector<1x2x32xf32> to vector<2x32xf32>
    %59 = arith.mulf %42, %33 : vector<2x32xf32>
    %60 = arith.addf %58, %59 : vector<2x32xf32>
    %61 = math.tanh %60 : vector<2x32xf32>
    %62 = arith.mulf %55, %61 : vector<2x32xf32>
    %63 = arith.addf %53, %62 : vector<2x32xf32>
    %64 = arith.index_cast %c0_i32_34 : i32 to index
    %c0_45 = arith.constant 0 : index
    %c0_46 = arith.constant 0 : index
    %65 = vector.load %arg6[%64, %c0_45, %c0_46] : memref<8x2x32xf32, #tpu.memory_space<vmem>>, vector<1x2x32xf32>
    %66 = vector.shape_cast %65 : vector<1x2x32xf32> to vector<2x32xf32>
    %67 = vector.shape_cast %63 : vector<2x32xf32> to vector<1x2x32xf32>
    tpu.vector_store %arg6[%64, %c0_45, %c0_46], %67 {strides = array<i32>} : memref<8x2x32xf32, #tpu.memory_space<vmem>>, vector<1x2x32xf32>,
    %c1_i32 = arith.constant 1 : i32
    %cst_47 = arith.constant dense<0.000000e+00> : vector<2x64xf32>
    %68 = tpu.matmul %63, %32, %cst_47 {dimension_numbers = #tpu.dot_dimension_numbers<[1], [0], [0], [1], [0, 0, 1, 1], [], []>} : vector<2x32xf32>, vector<32x64xf32>, vector<2x64xf32> -> vector<2x64xf32>
    %69 = arith.index_cast %c1_i32 : i32 to index
    %c0_48 = arith.constant 0 : index
    %c0_49 = arith.constant 0 : index
    %70 = vector.load %arg7[%69, %c0_48, %c0_49] : memref<8x2x32xf32, #tpu.memory_space<vmem>>, vector<1x2x32xf32>
    %71 = vector.shape_cast %70 : vector<1x2x32xf32> to vector<2x32xf32>
    %72 = vector.extract_strided_slice %68 {offsets = [0, 0], sizes = [2, 32], strides = [1, 1]} : vector<2x64xf32> to vector<2x32xf32>
    %73 = arith.addf %71, %72 : vector<2x32xf32>
    %74 = math.tanh %73 : vector<2x32xf32>
    %cst_50 = arith.constant 1.000000e+00 : f32
    %75 = vector.broadcast %cst_50 : f32 to vector<2x32xf32>
    %76 = arith.addf %75, %74 : vector<2x32xf32>
    %77 = arith.index_cast %c1_i32 : i32 to index
    %c0_51 = arith.constant 0 : index
    %c0_52 = arith.constant 0 : index
    %78 = vector.load %arg8[%77, %c0_51, %c0_52] : memref<8x2x32xf32, #tpu.memory_space<vmem>>, vector<1x2x32xf32>
    %79 = vector.shape_cast %78 : vector<1x2x32xf32> to vector<2x32xf32>
    %80 = vector.extract_strided_slice %68 {offsets = [0, 32], sizes = [2, 32], strides = [1, 1]} : vector<2x64xf32> to vector<2x32xf32>
    %81 = arith.addf %79, %80 : vector<2x32xf32>
    %82 = arith.negf %81 : vector<2x32xf32>
    %83 = math.exp %82 : vector<2x32xf32>
    %cst_53 = arith.constant 1.000000e+00 : f32
    %84 = vector.broadcast %cst_53 : f32 to vector<2x32xf32>
    %85 = arith.addf %84, %83 : vector<2x32xf32>
    %86 = arith.divf %84, %85 : vector<2x32xf32>
    %87 = arith.mulf %86, %63 : vector<2x32xf32>
    %cst_54 = arith.constant 1.000000e+00 : f32
    %88 = vector.broadcast %cst_54 : f32 to vector<2x32xf32>
    %89 = arith.subf %88, %86 : vector<2x32xf32>
    %90 = arith.index_cast %c1_i32 : i32 to index
    %c0_55 = arith.constant 0 : index
    %c0_56 = arith.constant 0 : index
    %91 = vector.load %arg9[%90, %c0_55, %c0_56] : memref<8x2x32xf32, #tpu.memory_space<vmem>>, vector<1x2x32xf32>
    %92 = vector.shape_cast %91 : vector<1x2x32xf32> to vector<2x32xf32>
    %93 = arith.mulf %76, %63 : vector<2x32xf32>
    %94 = arith.addf %92, %93 : vector<2x32xf32>
    %95 = math.tanh %94 : vector<2x32xf32>
    %96 = arith.mulf %89, %95 : vector<2x32xf32>
    %97 = arith.addf %87, %96 : vector<2x32xf32>
    %98 = arith.index_cast %c1_i32 : i32 to index
    %c0_57 = arith.constant 0 : index
    %c0_58 = arith.constant 0 : index
    %99 = vector.load %arg6[%98, %c0_57, %c0_58] : memref<8x2x32xf32, #tpu.memory_space<vmem>>, vector<1x2x32xf32>
    %100 = vector.shape_cast %99 : vector<1x2x32xf32> to vector<2x32xf32>
    %101 = vector.shape_cast %97 : vector<2x32xf32> to vector<1x2x32xf32>
    tpu.vector_store %arg6[%98, %c0_57, %c0_58], %101 {strides = array<i32>} : memref<8x2x32xf32, #tpu.memory_space<vmem>>, vector<1x2x32xf32>,
    %c2_i32 = arith.constant 2 : i32
    %cst_59 = arith.constant dense<0.000000e+00> : vector<2x64xf32>
    %102 = tpu.matmul %97, %32, %cst_59 {dimension_numbers = #tpu.dot_dimension_numbers<[1], [0], [0], [1], [0, 0, 1, 1], [], []>} : vector<2x32xf32>, vector<32x64xf32>, vector<2x64xf32> -> vector<2x64xf32>
    %103 = arith.index_cast %c2_i32 : i32 to index
    %c0_60 = arith.constant 0 : index
    %c0_61 = arith.constant 0 : index
    %104 = vector.load %arg7[%103, %c0_60, %c0_61] : memref<8x2x32xf32, #tpu.memory_space<vmem>>, vector<1x2x32xf32>
    %105 = vector.shape_cast %104 : vector<1x2x32xf32> to vector<2x32xf32>
    %106 = vector.extract_strided_slice %102 {offsets = [0, 0], sizes = [2, 32], strides = [1, 1]} : vector<2x64xf32> to vector<2x32xf32>
    %107 = arith.addf %105, %106 : vector<2x32xf32>
    %108 = math.tanh %107 : vector<2x32xf32>
    %cst_62 = arith.constant 1.000000e+00 : f32
    %109 = vector.broadcast %cst_62 : f32 to vector<2x32xf32>
    %110 = arith.addf %109, %108 : vector<2x32xf32>
    %111 = arith.index_cast %c2_i32 : i32 to index
    %c0_63 = arith.constant 0 : index
    %c0_64 = arith.constant 0 : index
    %112 = vector.load %arg8[%111, %c0_63, %c0_64] : memref<8x2x32xf32, #tpu.memory_space<vmem>>, vector<1x2x32xf32>
    %113 = vector.shape_cast %112 : vector<1x2x32xf32> to vector<2x32xf32>
    %114 = vector.extract_strided_slice %102 {offsets = [0, 32], sizes = [2, 32], strides = [1, 1]} : vector<2x64xf32> to vector<2x32xf32>
    %115 = arith.addf %113, %114 : vector<2x32xf32>
    %116 = arith.negf %115 : vector<2x32xf32>
    %117 = math.exp %116 : vector<2x32xf32>
    %cst_65 = arith.constant 1.000000e+00 : f32
    %118 = vector.broadcast %cst_65 : f32 to vector<2x32xf32>
    %119 = arith.addf %118, %117 : vector<2x32xf32>
    %120 = arith.divf %118, %119 : vector<2x32xf32>
    %121 = arith.mulf %120, %97 : vector<2x32xf32>
    %cst_66 = arith.constant 1.000000e+00 : f32
    %122 = vector.broadcast %cst_66 : f32 to vector<2x32xf32>
    %123 = arith.subf %122, %120 : vector<2x32xf32>
    %124 = arith.index_cast %c2_i32 : i32 to index
    %c0_67 = arith.constant 0 : index
    %c0_68 = arith.constant 0 : index
    %125 = vector.load %arg9[%124, %c0_67, %c0_68] : memref<8x2x32xf32, #tpu.memory_space<vmem>>, vector<1x2x32xf32>
    %126 = vector.shape_cast %125 : vector<1x2x32xf32> to vector<2x32xf32>
    %127 = arith.mulf %110, %97 : vector<2x32xf32>
    %128 = arith.addf %126, %127 : vector<2x32xf32>
    %129 = math.tanh %128 : vector<2x32xf32>
    %130 = arith.mulf %123, %129 : vector<2x32xf32>
    %131 = arith.addf %121, %130 : vector<2x32xf32>
    %132 = arith.index_cast %c2_i32 : i32 to index
    %c0_69 = arith.constant 0 : index
    %c0_70 = arith.constant 0 : index
    %133 = vector.load %arg6[%132, %c0_69, %c0_70] : memref<8x2x32xf32, #tpu.memory_space<vmem>>, vector<1x2x32xf32>
    %134 = vector.shape_cast %133 : vector<1x2x32xf32> to vector<2x32xf32>
    %135 = vector.shape_cast %131 : vector<2x32xf32> to vector<1x2x32xf32>
    tpu.vector_store %arg6[%132, %c0_69, %c0_70], %135 {strides = array<i32>} : memref<8x2x32xf32, #tpu.memory_space<vmem>>, vector<1x2x32xf32>,
    %c3_i32 = arith.constant 3 : i32
    %cst_71 = arith.constant dense<0.000000e+00> : vector<2x64xf32>
    %136 = tpu.matmul %131, %32, %cst_71 {dimension_numbers = #tpu.dot_dimension_numbers<[1], [0], [0], [1], [0, 0, 1, 1], [], []>} : vector<2x32xf32>, vector<32x64xf32>, vector<2x64xf32> -> vector<2x64xf32>
    %137 = arith.index_cast %c3_i32 : i32 to index
    %c0_72 = arith.constant 0 : index
    %c0_73 = arith.constant 0 : index
    %138 = vector.load %arg7[%137, %c0_72, %c0_73] : memref<8x2x32xf32, #tpu.memory_space<vmem>>, vector<1x2x32xf32>
    %139 = vector.shape_cast %138 : vector<1x2x32xf32> to vector<2x32xf32>
    %140 = vector.extract_strided_slice %136 {offsets = [0, 0], sizes = [2, 32], strides = [1, 1]} : vector<2x64xf32> to vector<2x32xf32>
    %141 = arith.addf %139, %140 : vector<2x32xf32>
    %142 = math.tanh %141 : vector<2x32xf32>
    %cst_74 = arith.constant 1.000000e+00 : f32
    %143 = vector.broadcast %cst_74 : f32 to vector<2x32xf32>
    %144 = arith.addf %143, %142 : vector<2x32xf32>
    %145 = arith.index_cast %c3_i32 : i32 to index
    %c0_75 = arith.constant 0 : index
    %c0_76 = arith.constant 0 : index
    %146 = vector.load %arg8[%145, %c0_75, %c0_76] : memref<8x2x32xf32, #tpu.memory_space<vmem>>, vector<1x2x32xf32>
    %147 = vector.shape_cast %146 : vector<1x2x32xf32> to vector<2x32xf32>
    %148 = vector.extract_strided_slice %136 {offsets = [0, 32], sizes = [2, 32], strides = [1, 1]} : vector<2x64xf32> to vector<2x32xf32>
    %149 = arith.addf %147, %148 : vector<2x32xf32>
    %150 = arith.negf %149 : vector<2x32xf32>
    %151 = math.exp %150 : vector<2x32xf32>
    %cst_77 = arith.constant 1.000000e+00 : f32
    %152 = vector.broadcast %cst_77 : f32 to vector<2x32xf32>
    %153 = arith.addf %152, %151 : vector<2x32xf32>
    %154 = arith.divf %152, %153 : vector<2x32xf32>
    %155 = arith.mulf %154, %131 : vector<2x32xf32>
    %cst_78 = arith.constant 1.000000e+00 : f32
    %156 = vector.broadcast %cst_78 : f32 to vector<2x32xf32>
    %157 = arith.subf %156, %154 : vector<2x32xf32>
    %158 = arith.index_cast %c3_i32 : i32 to index
    %c0_79 = arith.constant 0 : index
    %c0_80 = arith.constant 0 : index
    %159 = vector.load %arg9[%158, %c0_79, %c0_80] : memref<8x2x32xf32, #tpu.memory_space<vmem>>, vector<1x2x32xf32>
    %160 = vector.shape_cast %159 : vector<1x2x32xf32> to vector<2x32xf32>
    %161 = arith.mulf %144, %131 : vector<2x32xf32>
    %162 = arith.addf %160, %161 : vector<2x32xf32>
    %163 = math.tanh %162 : vector<2x32xf32>
    %164 = arith.mulf %157, %163 : vector<2x32xf32>
    %165 = arith.addf %155, %164 : vector<2x32xf32>
    %166 = arith.index_cast %c3_i32 : i32 to index
    %c0_81 = arith.constant 0 : index
    %c0_82 = arith.constant 0 : index
    %167 = vector.load %arg6[%166, %c0_81, %c0_82] : memref<8x2x32xf32, #tpu.memory_space<vmem>>, vector<1x2x32xf32>
    %168 = vector.shape_cast %167 : vector<1x2x32xf32> to vector<2x32xf32>
    %169 = vector.shape_cast %165 : vector<2x32xf32> to vector<1x2x32xf32>
    tpu.vector_store %arg6[%166, %c0_81, %c0_82], %169 {strides = array<i32>} : memref<8x2x32xf32, #tpu.memory_space<vmem>>, vector<1x2x32xf32>,
    %c4_i32 = arith.constant 4 : i32
    %cst_83 = arith.constant dense<0.000000e+00> : vector<2x64xf32>
    %170 = tpu.matmul %165, %32, %cst_83 {dimension_numbers = #tpu.dot_dimension_numbers<[1], [0], [0], [1], [0, 0, 1, 1], [], []>} : vector<2x32xf32>, vector<32x64xf32>, vector<2x64xf32> -> vector<2x64xf32>
    %171 = arith.index_cast %c4_i32 : i32 to index
    %c0_84 = arith.constant 0 : index
    %c0_85 = arith.constant 0 : index
    %172 = vector.load %arg7[%171, %c0_84, %c0_85] : memref<8x2x32xf32, #tpu.memory_space<vmem>>, vector<1x2x32xf32>
    %173 = vector.shape_cast %172 : vector<1x2x32xf32> to vector<2x32xf32>
    %174 = vector.extract_strided_slice %170 {offsets = [0, 0], sizes = [2, 32], strides = [1, 1]} : vector<2x64xf32> to vector<2x32xf32>
    %175 = arith.addf %173, %174 : vector<2x32xf32>
    %176 = math.tanh %175 : vector<2x32xf32>
    %cst_86 = arith.constant 1.000000e+00 : f32
    %177 = vector.broadcast %cst_86 : f32 to vector<2x32xf32>
    %178 = arith.addf %177, %176 : vector<2x32xf32>
    %179 = arith.index_cast %c4_i32 : i32 to index
    %c0_87 = arith.constant 0 : index
    %c0_88 = arith.constant 0 : index
    %180 = vector.load %arg8[%179, %c0_87, %c0_88] : memref<8x2x32xf32, #tpu.memory_space<vmem>>, vector<1x2x32xf32>
    %181 = vector.shape_cast %180 : vector<1x2x32xf32> to vector<2x32xf32>
    %182 = vector.extract_strided_slice %170 {offsets = [0, 32], sizes = [2, 32], strides = [1, 1]} : vector<2x64xf32> to vector<2x32xf32>
    %183 = arith.addf %181, %182 : vector<2x32xf32>
    %184 = arith.negf %183 : vector<2x32xf32>
    %185 = math.exp %184 : vector<2x32xf32>
    %cst_89 = arith.constant 1.000000e+00 : f32
    %186 = vector.broadcast %cst_89 : f32 to vector<2x32xf32>
    %187 = arith.addf %186, %185 : vector<2x32xf32>
    %188 = arith.divf %186, %187 : vector<2x32xf32>
    %189 = arith.mulf %188, %165 : vector<2x32xf32>
    %cst_90 = arith.constant 1.000000e+00 : f32
    %190 = vector.broadcast %cst_90 : f32 to vector<2x32xf32>
    %191 = arith.subf %190, %188 : vector<2x32xf32>
    %192 = arith.index_cast %c4_i32 : i32 to index
    %c0_91 = arith.constant 0 : index
    %c0_92 = arith.constant 0 : index
    %193 = vector.load %arg9[%192, %c0_91, %c0_92] : memref<8x2x32xf32, #tpu.memory_space<vmem>>, vector<1x2x32xf32>
    %194 = vector.shape_cast %193 : vector<1x2x32xf32> to vector<2x32xf32>
    %195 = arith.mulf %178, %165 : vector<2x32xf32>
    %196 = arith.addf %194, %195 : vector<2x32xf32>
    %197 = math.tanh %196 : vector<2x32xf32>
    %198 = arith.mulf %191, %197 : vector<2x32xf32>
    %199 = arith.addf %189, %198 : vector<2x32xf32>
    %200 = arith.index_cast %c4_i32 : i32 to index
    %c0_93 = arith.constant 0 : index
    %c0_94 = arith.constant 0 : index
    %201 = vector.load %arg6[%200, %c0_93, %c0_94] : memref<8x2x32xf32, #tpu.memory_space<vmem>>, vector<1x2x32xf32>
    %202 = vector.shape_cast %201 : vector<1x2x32xf32> to vector<2x32xf32>
    %203 = vector.shape_cast %199 : vector<2x32xf32> to vector<1x2x32xf32>
    tpu.vector_store %arg6[%200, %c0_93, %c0_94], %203 {strides = array<i32>} : memref<8x2x32xf32, #tpu.memory_space<vmem>>, vector<1x2x32xf32>,
    %c5_i32 = arith.constant 5 : i32
    %cst_95 = arith.constant dense<0.000000e+00> : vector<2x64xf32>
    %204 = tpu.matmul %199, %32, %cst_95 {dimension_numbers = #tpu.dot_dimension_numbers<[1], [0], [0], [1], [0, 0, 1, 1], [], []>} : vector<2x32xf32>, vector<32x64xf32>, vector<2x64xf32> -> vector<2x64xf32>
    %205 = arith.index_cast %c5_i32 : i32 to index
    %c0_96 = arith.constant 0 : index
    %c0_97 = arith.constant 0 : index
    %206 = vector.load %arg7[%205, %c0_96, %c0_97] : memref<8x2x32xf32, #tpu.memory_space<vmem>>, vector<1x2x32xf32>
    %207 = vector.shape_cast %206 : vector<1x2x32xf32> to vector<2x32xf32>
    %208 = vector.extract_strided_slice %204 {offsets = [0, 0], sizes = [2, 32], strides = [1, 1]} : vector<2x64xf32> to vector<2x32xf32>
    %209 = arith.addf %207, %208 : vector<2x32xf32>
    %210 = math.tanh %209 : vector<2x32xf32>
    %cst_98 = arith.constant 1.000000e+00 : f32
    %211 = vector.broadcast %cst_98 : f32 to vector<2x32xf32>
    %212 = arith.addf %211, %210 : vector<2x32xf32>
    %213 = arith.index_cast %c5_i32 : i32 to index
    %c0_99 = arith.constant 0 : index
    %c0_100 = arith.constant 0 : index
    %214 = vector.load %arg8[%213, %c0_99, %c0_100] : memref<8x2x32xf32, #tpu.memory_space<vmem>>, vector<1x2x32xf32>
    %215 = vector.shape_cast %214 : vector<1x2x32xf32> to vector<2x32xf32>
    %216 = vector.extract_strided_slice %204 {offsets = [0, 32], sizes = [2, 32], strides = [1, 1]} : vector<2x64xf32> to vector<2x32xf32>
    %217 = arith.addf %215, %216 : vector<2x32xf32>
    %218 = arith.negf %217 : vector<2x32xf32>
    %219 = math.exp %218 : vector<2x32xf32>
    %cst_101 = arith.constant 1.000000e+00 : f32
    %220 = vector.broadcast %cst_101 : f32 to vector<2x32xf32>
    %221 = arith.addf %220, %219 : vector<2x32xf32>
    %222 = arith.divf %220, %221 : vector<2x32xf32>
    %223 = arith.mulf %222, %199 : vector<2x32xf32>
    %cst_102 = arith.constant 1.000000e+00 : f32
    %224 = vector.broadcast %cst_102 : f32 to vector<2x32xf32>
    %225 = arith.subf %224, %222 : vector<2x32xf32>
    %226 = arith.index_cast %c5_i32 : i32 to index
    %c0_103 = arith.constant 0 : index
    %c0_104 = arith.constant 0 : index
    %227 = vector.load %arg9[%226, %c0_103, %c0_104] : memref<8x2x32xf32, #tpu.memory_space<vmem>>, vector<1x2x32xf32>
    %228 = vector.shape_cast %227 : vector<1x2x32xf32> to vector<2x32xf32>
    %229 = arith.mulf %212, %199 : vector<2x32xf32>
    %230 = arith.addf %228, %229 : vector<2x32xf32>
    %231 = math.tanh %230 : vector<2x32xf32>
    %232 = arith.mulf %225, %231 : vector<2x32xf32>
    %233 = arith.addf %223, %232 : vector<2x32xf32>
    %234 = arith.index_cast %c5_i32 : i32 to index
    %c0_105 = arith.constant 0 : index
    %c0_106 = arith.constant 0 : index
    %235 = vector.load %arg6[%234, %c0_105, %c0_106] : memref<8x2x32xf32, #tpu.memory_space<vmem>>, vector<1x2x32xf32>
    %236 = vector.shape_cast %235 : vector<1x2x32xf32> to vector<2x32xf32>
    %237 = vector.shape_cast %233 : vector<2x32xf32> to vector<1x2x32xf32>
    tpu.vector_store %arg6[%234, %c0_105, %c0_106], %237 {strides = array<i32>} : memref<8x2x32xf32, #tpu.memory_space<vmem>>, vector<1x2x32xf32>,
    %c6_i32 = arith.constant 6 : i32
    %cst_107 = arith.constant dense<0.000000e+00> : vector<2x64xf32>
    %238 = tpu.matmul %233, %32, %cst_107 {dimension_numbers = #tpu.dot_dimension_numbers<[1], [0], [0], [1], [0, 0, 1, 1], [], []>} : vector<2x32xf32>, vector<32x64xf32>, vector<2x64xf32> -> vector<2x64xf32>
    %239 = arith.index_cast %c6_i32 : i32 to index
    %c0_108 = arith.constant 0 : index
    %c0_109 = arith.constant 0 : index
    %240 = vector.load %arg7[%239, %c0_108, %c0_109] : memref<8x2x32xf32, #tpu.memory_space<vmem>>, vector<1x2x32xf32>
    %241 = vector.shape_cast %240 : vector<1x2x32xf32> to vector<2x32xf32>
    %242 = vector.extract_strided_slice %238 {offsets = [0, 0], sizes = [2, 32], strides = [1, 1]} : vector<2x64xf32> to vector<2x32xf32>
    %243 = arith.addf %241, %242 : vector<2x32xf32>
    %244 = math.tanh %243 : vector<2x32xf32>
    %cst_110 = arith.constant 1.000000e+00 : f32
    %245 = vector.broadcast %cst_110 : f32 to vector<2x32xf32>
    %246 = arith.addf %245, %244 : vector<2x32xf32>
    %247 = arith.index_cast %c6_i32 : i32 to index
    %c0_111 = arith.constant 0 : index
    %c0_112 = arith.constant 0 : index
    %248 = vector.load %arg8[%247, %c0_111, %c0_112] : memref<8x2x32xf32, #tpu.memory_space<vmem>>, vector<1x2x32xf32>
    %249 = vector.shape_cast %248 : vector<1x2x32xf32> to vector<2x32xf32>
    %250 = vector.extract_strided_slice %238 {offsets = [0, 32], sizes = [2, 32], strides = [1, 1]} : vector<2x64xf32> to vector<2x32xf32>
    %251 = arith.addf %249, %250 : vector<2x32xf32>
    %252 = arith.negf %251 : vector<2x32xf32>
    %253 = math.exp %252 : vector<2x32xf32>
    %cst_113 = arith.constant 1.000000e+00 : f32
    %254 = vector.broadcast %cst_113 : f32 to vector<2x32xf32>
    %255 = arith.addf %254, %253 : vector<2x32xf32>
    %256 = arith.divf %254, %255 : vector<2x32xf32>
    %257 = arith.mulf %256, %233 : vector<2x32xf32>
    %cst_114 = arith.constant 1.000000e+00 : f32
    %258 = vector.broadcast %cst_114 : f32 to vector<2x32xf32>
    %259 = arith.subf %258, %256 : vector<2x32xf32>
    %260 = arith.index_cast %c6_i32 : i32 to index
    %c0_115 = arith.constant 0 : index
    %c0_116 = arith.constant 0 : index
    %261 = vector.load %arg9[%260, %c0_115, %c0_116] : memref<8x2x32xf32, #tpu.memory_space<vmem>>, vector<1x2x32xf32>
    %262 = vector.shape_cast %261 : vector<1x2x32xf32> to vector<2x32xf32>
    %263 = arith.mulf %246, %233 : vector<2x32xf32>
    %264 = arith.addf %262, %263 : vector<2x32xf32>
    %265 = math.tanh %264 : vector<2x32xf32>
    %266 = arith.mulf %259, %265 : vector<2x32xf32>
    %267 = arith.addf %257, %266 : vector<2x32xf32>
    %268 = arith.index_cast %c6_i32 : i32 to index
    %c0_117 = arith.constant 0 : index
    %c0_118 = arith.constant 0 : index
    %269 = vector.load %arg6[%268, %c0_117, %c0_118] : memref<8x2x32xf32, #tpu.memory_space<vmem>>, vector<1x2x32xf32>
    %270 = vector.shape_cast %269 : vector<1x2x32xf32> to vector<2x32xf32>
    %271 = vector.shape_cast %267 : vector<2x32xf32> to vector<1x2x32xf32>
    tpu.vector_store %arg6[%268, %c0_117, %c0_118], %271 {strides = array<i32>} : memref<8x2x32xf32, #tpu.memory_space<vmem>>, vector<1x2x32xf32>,
    %c7_i32 = arith.constant 7 : i32
    %cst_119 = arith.constant dense<0.000000e+00> : vector<2x64xf32>
    %272 = tpu.matmul %267, %32, %cst_119 {dimension_numbers = #tpu.dot_dimension_numbers<[1], [0], [0], [1], [0, 0, 1, 1], [], []>} : vector<2x32xf32>, vector<32x64xf32>, vector<2x64xf32> -> vector<2x64xf32>
    %273 = arith.index_cast %c7_i32 : i32 to index
    %c0_120 = arith.constant 0 : index
    %c0_121 = arith.constant 0 : index
    %274 = vector.load %arg7[%273, %c0_120, %c0_121] : memref<8x2x32xf32, #tpu.memory_space<vmem>>, vector<1x2x32xf32>
    %275 = vector.shape_cast %274 : vector<1x2x32xf32> to vector<2x32xf32>
    %276 = vector.extract_strided_slice %272 {offsets = [0, 0], sizes = [2, 32], strides = [1, 1]} : vector<2x64xf32> to vector<2x32xf32>
    %277 = arith.addf %275, %276 : vector<2x32xf32>
    %278 = math.tanh %277 : vector<2x32xf32>
    %cst_122 = arith.constant 1.000000e+00 : f32
    %279 = vector.broadcast %cst_122 : f32 to vector<2x32xf32>
    %280 = arith.addf %279, %278 : vector<2x32xf32>
    %281 = arith.index_cast %c7_i32 : i32 to index
    %c0_123 = arith.constant 0 : index
    %c0_124 = arith.constant 0 : index
    %282 = vector.load %arg8[%281, %c0_123, %c0_124] : memref<8x2x32xf32, #tpu.memory_space<vmem>>, vector<1x2x32xf32>
    %283 = vector.shape_cast %282 : vector<1x2x32xf32> to vector<2x32xf32>
    %284 = vector.extract_strided_slice %272 {offsets = [0, 32], sizes = [2, 32], strides = [1, 1]} : vector<2x64xf32> to vector<2x32xf32>
    %285 = arith.addf %283, %284 : vector<2x32xf32>
    %286 = arith.negf %285 : vector<2x32xf32>
    %287 = math.exp %286 : vector<2x32xf32>
    %cst_125 = arith.constant 1.000000e+00 : f32
    %288 = vector.broadcast %cst_125 : f32 to vector<2x32xf32>
    %289 = arith.addf %288, %287 : vector<2x32xf32>
    %290 = arith.divf %288, %289 : vector<2x32xf32>
    %291 = arith.mulf %290, %267 : vector<2x32xf32>
    %cst_126 = arith.constant 1.000000e+00 : f32
    %292 = vector.broadcast %cst_126 : f32 to vector<2x32xf32>
    %293 = arith.subf %292, %290 : vector<2x32xf32>
    %294 = arith.index_cast %c7_i32 : i32 to index
    %c0_127 = arith.constant 0 : index
    %c0_128 = arith.constant 0 : index
    %295 = vector.load %arg9[%294, %c0_127, %c0_128] : memref<8x2x32xf32, #tpu.memory_space<vmem>>, vector<1x2x32xf32>
    %296 = vector.shape_cast %295 : vector<1x2x32xf32> to vector<2x32xf32>
    %297 = arith.mulf %280, %267 : vector<2x32xf32>
    %298 = arith.addf %296, %297 : vector<2x32xf32>
    %299 = math.tanh %298 : vector<2x32xf32>
    %300 = arith.mulf %293, %299 : vector<2x32xf32>
    %301 = arith.addf %291, %300 : vector<2x32xf32>
    %302 = arith.index_cast %c7_i32 : i32 to index
    %c0_129 = arith.constant 0 : index
    %c0_130 = arith.constant 0 : index
    %303 = vector.load %arg6[%302, %c0_129, %c0_130] : memref<8x2x32xf32, #tpu.memory_space<vmem>>, vector<1x2x32xf32>
    %304 = vector.shape_cast %303 : vector<1x2x32xf32> to vector<2x32xf32>
    %305 = vector.shape_cast %301 : vector<2x32xf32> to vector<1x2x32xf32>
    tpu.vector_store %arg6[%302, %c0_129, %c0_130], %305 {strides = array<i32>} : memref<8x2x32xf32, #tpu.memory_space<vmem>>, vector<1x2x32xf32>,
    %c8_i32 = arith.constant 8 : i32
    %c0_131 = arith.constant 0 : index
    %c0_132 = arith.constant 0 : index
    %306 = vector.load %arg10[%c0_131, %c0_132] : memref<2x32xf32, #tpu.memory_space<vmem>>, vector<2x32xf32>
    tpu.vector_store %arg10[%c0_131, %c0_132], %301 {strides = array<i32>} : memref<2x32xf32, #tpu.memory_space<vmem>>, vector<2x32xf32>,
    return
  }
  func.func @transform_0(%arg0: i32, %arg1: i32) -> (i32, i32, i32) {
    %c0_i32 = arith.constant 0 : i32
    %c0_i32_0 = arith.constant 0 : i32
    return %arg1, %arg0, %c0_i32 : i32, i32, i32
  }
  func.func @transform_1(%arg0: i32, %arg1: i32) -> (i32, i32, i32) {
    %c0_i32 = arith.constant 0 : i32
    %c0_i32_0 = arith.constant 0 : i32
    %c0_i32_1 = arith.constant 0 : i32
    %c0_i32_2 = arith.constant 0 : i32
    return %c0_i32, %c0_i32_0, %c0_i32_1 : i32, i32, i32
  }
  func.func @transform_2(%arg0: i32, %arg1: i32) -> (i32, i32, i32) {
    %c0_i32 = arith.constant 0 : i32
    %c0_i32_0 = arith.constant 0 : i32
    %c0_i32_1 = arith.constant 0 : i32
    %c0_i32_2 = arith.constant 0 : i32
    return %c0_i32, %c0_i32_0, %c0_i32_1 : i32, i32, i32
  }
  func.func @transform_3(%arg0: i32, %arg1: i32) -> (i32, i32) {
    %c0_i32 = arith.constant 0 : i32
    %c0_i32_0 = arith.constant 0 : i32
    %c0_i32_1 = arith.constant 0 : i32
    return %c0_i32, %c0_i32_0 : i32, i32
  }
  func.func @transform_4(%arg0: i32, %arg1: i32) -> (i32, i32, i32) {
    %c0_i32 = arith.constant 0 : i32
    %c0_i32_0 = arith.constant 0 : i32
    return %arg1, %arg0, %c0_i32 : i32, i32, i32
  }
}

module attributes {stable_mosaic.version = 11 : i64} {
  func.func @nbrc_recurrent_kernel(%arg0: i32, %arg1: i32, %arg2: memref<8x2x32xf32, #tpu.memory_space<vmem>>, %arg3: memref<3x32x32xf32, #tpu.memory_space<vmem>>, %arg4: memref<3x1x32xf32, #tpu.memory_space<vmem>>, %arg5: memref<32x64xf32, #tpu.memory_space<vmem>>, %arg6: memref<8x2x32xf32, #tpu.memory_space<vmem>>, %arg7: memref<8x2x32xf32, #tpu.memory_space<vmem>>, %arg8: memref<8x2x32xf32, #tpu.memory_space<vmem>>, %arg9: memref<8x2x32xf32, #tpu.memory_space<vmem>>, %arg10: memref<2x32xf32, #tpu.memory_space<vmem>>) attributes {dimension_semantics = [#tpu.dimension_semantics<parallel>, #tpu.dimension_semantics<arbitrary>], iteration_bounds = array<i64: 1, 1>, scalar_prefetch = 0 : i64, scratch_operands = 4 : i64, tpu.core_type = #tpu.core_type<tc>, window_params = [{transform_indices = @transform_0, window_bounds = array<i64: 8, 2, 32>}, {pipeline_mode = #tpu.pipeline_mode<synchronous>, transform_indices = @transform_1, window_bounds = array<i64: 3, 32, 32>}, {pipeline_mode = #tpu.pipeline_mode<synchronous>, transform_indices = @transform_2, window_bounds = array<i64: 3, 1, 32>}, {pipeline_mode = #tpu.pipeline_mode<synchronous>, transform_indices = @transform_3, window_bounds = array<i64: 32, 64>}, {transform_indices = @transform_4, window_bounds = array<i64: 8, 2, 32>}]} {
    %c0_i32 = arith.constant 0 : i32
    %0 = arith.cmpi eq, %arg1, %c0_i32 : i32
    %1 = arith.extui %0 : i1 to i32
    %c0_i32_0 = arith.constant 0 : i32
    %2 = arith.cmpi ne, %1, %c0_i32_0 : i32
    scf.if %2 {
      %cst_133 = arith.constant 0.000000e+00 : f32
      %307 = vector.broadcast %cst_133 : f32 to vector<2x32xf32>
      %c0_134 = arith.constant 0 : index
      %c0_135 = arith.constant 0 : index
      %308 = vector.load %arg10[%c0_134, %c0_135] : memref<2x32xf32, #tpu.memory_space<vmem>>, vector<2x32xf32>
      tpu.vector_store %arg10[%c0_134, %c0_135], %307 {strides = array<i32>} : memref<2x32xf32, #tpu.memory_space<vmem>>, vector<2x32xf32>,
    } else {
    }
    %c0 = arith.constant 0 : index
    %c0_1 = arith.constant 0 : index
    %c0_2 = arith.constant 0 : index
    %3 = vector.load %arg2[%c0, %c0_1, %c0_2] : memref<8x2x32xf32, #tpu.memory_space<vmem>>, vector<8x2x32xf32>
    %4 = vector.shape_cast %3 : vector<8x2x32xf32> to vector<16x32xf32>
    %c0_3 = arith.constant 0 : index
    %c0_4 = arith.constant 0 : index
    %c0_5 = arith.constant 0 : index
    %5 = vector.load %arg3[%c0_3, %c0_4, %c0_5] : memref<3x32x32xf32, #tpu.memory_space<vmem>>, vector<1x32x32xf32>
    %6 = vector.shape_cast %5 : vector<1x32x32xf32> to vector<32x32xf32>
    %cst = arith.constant dense<0.000000e+00> : vector<16x32xf32>
    %7 = tpu.matmul %4, %6, %cst {dimension_numbers = #tpu.dot_dimension_numbers<[1], [0], [0], [1], [0, 0, 1, 1], [], []>} : vector<16x32xf32>, vector<32x32xf32>, vector<16x32xf32> -> vector<16x32xf32>
    %c0_6 = arith.constant 0 : index
    %c0_7 = arith.constant 0 : index
    %c0_8 = arith.constant 0 : index
    %8 = vector.load %arg4[%c0_6, %c0_7, %c0_8] : memref<3x1x32xf32, #tpu.memory_space<vmem>>, vector<1x1x32xf32>
    %9 = vector.shape_cast %8 : vector<1x1x32xf32> to vector<1x32xf32>
    %10 = vector.broadcast %9 : vector<1x32xf32> to vector<16x32xf32>
    %11 = arith.addf %7, %10 : vector<16x32xf32>
    %12 = vector.shape_cast %11 : vector<16x32xf32> to vector<8x2x32xf32>
    %c0_9 = arith.constant 0 : index
    %c0_10 = arith.constant 0 : index
    %c0_11 = arith.constant 0 : index
    %13 = vector.load %arg7[%c0_9, %c0_10, %c0_11] : memref<8x2x32xf32, #tpu.memory_space<vmem>>, vector<8x2x32xf32>
    tpu.vector_store %arg7[%c0_9, %c0_10, %c0_11], %12 {strides = array<i32>} : memref<8x2x32xf32, #tpu.memory_space<vmem>>, vector<8x2x32xf32>,
    %c1 = arith.constant 1 : index
    %c0_12 = arith.constant 0 : index
    %c0_13 = arith.constant 0 : index
    %14 = vector.load %arg3[%c1, %c0_12, %c0_13] : memref<3x32x32xf32, #tpu.memory_space<vmem>>, vector<1x32x32xf32>
    %15 = vector.shape_cast %14 : vector<1x32x32xf32> to vector<32x32xf32>
    %cst_14 = arith.constant dense<0.000000e+00> : vector<16x32xf32>
    %16 = tpu.matmul %4, %15, %cst_14 {dimension_numbers = #tpu.dot_dimension_numbers<[1], [0], [0], [1], [0, 0, 1, 1], [], []>} : vector<16x32xf32>, vector<32x32xf32>, vector<16x32xf32> -> vector<16x32xf32>
    %c1_15 = arith.constant 1 : index
    %c0_16 = arith.constant 0 : index
    %c0_17 = arith.constant 0 : index
    %17 = vector.load %arg4[%c1_15, %c0_16, %c0_17] : memref<3x1x32xf32, #tpu.memory_space<vmem>>, vector<1x1x32xf32>
    %18 = vector.shape_cast %17 : vector<1x1x32xf32> to vector<1x32xf32>
    %19 = vector.broadcast %18 : vector<1x32xf32> to vector<16x32xf32>
    %20 = arith.addf %16, %19 : vector<16x32xf32>
    %21 = vector.shape_cast %20 : vector<16x32xf32> to vector<8x2x32xf32>
    %c0_18 = arith.constant 0 : index
    %c0_19 = arith.constant 0 : index
    %c0_20 = arith.constant 0 : index
    %22 = vector.load %arg8[%c0_18, %c0_19, %c0_20] : memref<8x2x32xf32, #tpu.memory_space<vmem>>, vector<8x2x32xf32>
    tpu.vector_store %arg8[%c0_18, %c0_19, %c0_20], %21 {strides = array<i32>} : memref<8x2x32xf32, #tpu.memory_space<vmem>>, vector<8x2x32xf32>,
    %c2 = arith.constant 2 : index
    %c0_21 = arith.constant 0 : index
    %c0_22 = arith.constant 0 : index
    %23 = vector.load %arg3[%c2, %c0_21, %c0_22] : memref<3x32x32xf32, #tpu.memory_space<vmem>>, vector<1x32x32xf32>
    %24 = vector.shape_cast %23 : vector<1x32x32xf32> to vector<32x32xf32>
    %cst_23 = arith.constant dense<0.000000e+00> : vector<16x32xf32>
    %25 = tpu.matmul %4, %24, %cst_23 {dimension_numbers = #tpu.dot_dimension_numbers<[1], [0], [0], [1], [0, 0, 1, 1], [], []>} : vector<16x32xf32>, vector<32x32xf32>, vector<16x32xf32> -> vector<16x32xf32>
    %c2_24 = arith.constant 2 : index
    %c0_25 = arith.constant 0 : index
    %c0_26 = arith.constant 0 : index
    %26 = vector.load %arg4[%c2_24, %c0_25, %c0_26] : memref<3x1x32xf32, #tpu.memory_space<vmem>>, vector<1x1x32xf32>
    %27 = vector.shape_cast %26 : vector<1x1x32xf32> to vector<1x32xf32>
    %28 = vector.broadcast %27 : vector<1x32xf32> to vector<16x32xf32>
    %29 = arith.addf %25, %28 : vector<16x32xf32>
    %30 = vector.shape_cast %29 : vector<16x32xf32> to vector<8x2x32xf32>
    %c0_27 = arith.constant 0 : index
    %c0_28 = arith.constant 0 : index
    %c0_29 = arith.constant 0 : index
    %31 = vector.load %arg9[%c0_27, %c0_28, %c0_29] : memref<8x2x32xf32, #tpu.memory_space<vmem>>, vector<8x2x32xf32>
    tpu.vector_store %arg9[%c0_27, %c0_28, %c0_29], %30 {strides = array<i32>} : memref<8x2x32xf32, #tpu.memory_space<vmem>>, vector<8x2x32xf32>,
    %c0_30 = arith.constant 0 : index
    %c0_31 = arith.constant 0 : index
    %32 = vector.load %arg5[%c0_30, %c0_31] : memref<32x64xf32, #tpu.memory_space<vmem>>, vector<32x64xf32>
    %c0_32 = arith.constant 0 : index
    %c0_33 = arith.constant 0 : index
    %33 = vector.load %arg10[%c0_32, %c0_33] : memref<2x32xf32, #tpu.memory_space<vmem>>, vector<2x32xf32>
    %c0_i32_34 = arith.constant 0 : i32
    %cst_35 = arith.constant dense<0.000000e+00> : vector<2x64xf32>
    %34 = tpu.matmul %33, %32, %cst_35 {dimension_numbers = #tpu.dot_dimension_numbers<[1], [0], [0], [1], [0, 0, 1, 1], [], []>} : vector<2x32xf32>, vector<32x64xf32>, vector<2x64xf32> -> vector<2x64xf32>
    %35 = arith.index_cast %c0_i32_34 : i32 to index
    %c0_36 = arith.constant 0 : index
    %c0_37 = arith.constant 0 : index
    %36 = vector.load %arg7[%35, %c0_36, %c0_37] : memref<8x2x32xf32, #tpu.memory_space<vmem>>, vector<1x2x32xf32>
    %37 = vector.shape_cast %36 : vector<1x2x32xf32> to vector<2x32xf32>
    %38 = vector.extract_strided_slice %34 {offsets = [0, 0], sizes = [2, 32], strides = [1, 1]} : vector<2x64xf32> to vector<2x32xf32>
    %39 = arith.addf %37, %38 : vector<2x32xf32>
    %40 = math.tanh %39 : vector<2x32xf32>
    %cst_38 = arith.constant 1.000000e+00 : f32
    %41 = vector.broadcast %cst_38 : f32 to vector<2x32xf32>
    %42 = arith.addf %41, %40 : vector<2x32xf32>
    %43 = arith.index_cast %c0_i32_34 : i32 to index
    %c0_39 = arith.constant 0 : index
    %c0_40 = arith.constant 0 : index
    %44 = vector.load %arg8[%43, %c0_39, %c0_40] : memref<8x2x32xf32, #tpu.memory_space<vmem>>, vector<1x2x32xf32>
    %45 = vector.shape_cast %44 : vector<1x2x32xf32> to vector<2x32xf32>
    %46 = vector.extract_strided_slice %34 {offsets = [0, 32], sizes = [2, 32], strides = [1, 1]} : vector<2x64xf32> to vector<2x32xf32>
    %47 = arith.addf %45, %46 : vector<2x32xf32>
    %48 = arith.negf %47 : vector<2x32xf32>
    %49 = math.exp %48 : vector<2x32xf32>
    %cst_41 = arith.constant 1.000000e+00 : f32
    %50 = vector.broadcast %cst_41 : f32 to vector<2x32xf32>
    %51 = arith.addf %50, %49 : vector<2x32xf32>
    %52 = arith.divf %50, %51 : vector<2x32xf32>
    %53 = arith.mulf %52, %33 : vector<2x32xf32>
    %cst_42 = arith.constant 1.000000e+00 : f32
    %54 = vector.broadcast %cst_42 : f32 to vector<2x32xf32>
    %55 = arith.subf %54, %52 : vector<2x32xf32>
    %56 = arith.index_cast %c0_i32_34 : i32 to index
    %c0_43 = arith.constant 0 : index
    %c0_44 = arith.constant 0 : index
    %57 = vector.load %arg9[%56, %c0_43, %c0_44] : memref<8x2x32xf32, #tpu.memory_space<vmem>>, vector<1x2x32xf32>
    %58 = vector.shape_cast %57 : vector<1x2x32xf32> to vector<2x32xf32>
    %59 = arith.mulf %42, %33 : vector<2x32xf32>
    %60 = arith.addf %58, %59 : vector<2x32xf32>
    %61 = math.tanh %60 : vector<2x32xf32>
    %62 = arith.mulf %55, %61 : vector<2x32xf32>
    %63 = arith.addf %53, %62 : vector<2x32xf32>
    %64 = arith.index_cast %c0_i32_34 : i32 to index
    %c0_45 = arith.constant 0 : index
    %c0_46 = arith.constant 0 : index
    %65 = vector.load %arg6[%64, %c0_45, %c0_46] : memref<8x2x32xf32, #tpu.memory_space<vmem>>, vector<1x2x32xf32>
    %66 = vector.shape_cast %65 : vector<1x2x32xf32> to vector<2x32xf32>
    %67 = vector.shape_cast %63 : vector<2x32xf32> to vector<1x2x32xf32>
    tpu.vector_store %arg6[%64, %c0_45, %c0_46], %67 {strides = array<i32>} : memref<8x2x32xf32, #tpu.memory_space<vmem>>, vector<1x2x32xf32>,
    %c1_i32 = arith.constant 1 : i32
    %cst_47 = arith.constant dense<0.000000e+00> : vector<2x64xf32>
    %68 = tpu.matmul %63, %32, %cst_47 {dimension_numbers = #tpu.dot_dimension_numbers<[1], [0], [0], [1], [0, 0, 1, 1], [], []>} : vector<2x32xf32>, vector<32x64xf32>, vector<2x64xf32> -> vector<2x64xf32>
    %69 = arith.index_cast %c1_i32 : i32 to index
    %c0_48 = arith.constant 0 : index
    %c0_49 = arith.constant 0 : index
    %70 = vector.load %arg7[%69, %c0_48, %c0_49] : memref<8x2x32xf32, #tpu.memory_space<vmem>>, vector<1x2x32xf32>
    %71 = vector.shape_cast %70 : vector<1x2x32xf32> to vector<2x32xf32>
    %72 = vector.extract_strided_slice %68 {offsets = [0, 0], sizes = [2, 32], strides = [1, 1]} : vector<2x64xf32> to vector<2x32xf32>
    %73 = arith.addf %71, %72 : vector<2x32xf32>
    %74 = math.tanh %73 : vector<2x32xf32>
    %cst_50 = arith.constant 1.000000e+00 : f32
    %75 = vector.broadcast %cst_50 : f32 to vector<2x32xf32>
    %76 = arith.addf %75, %74 : vector<2x32xf32>
    %77 = arith.index_cast %c1_i32 : i32 to index
    %c0_51 = arith.constant 0 : index
    %c0_52 = arith.constant 0 : index
    %78 = vector.load %arg8[%77, %c0_51, %c0_52] : memref<8x2x32xf32, #tpu.memory_space<vmem>>, vector<1x2x32xf32>
    %79 = vector.shape_cast %78 : vector<1x2x32xf32> to vector<2x32xf32>
    %80 = vector.extract_strided_slice %68 {offsets = [0, 32], sizes = [2, 32], strides = [1, 1]} : vector<2x64xf32> to vector<2x32xf32>
    %81 = arith.addf %79, %80 : vector<2x32xf32>
    %82 = arith.negf %81 : vector<2x32xf32>
    %83 = math.exp %82 : vector<2x32xf32>
    %cst_53 = arith.constant 1.000000e+00 : f32
    %84 = vector.broadcast %cst_53 : f32 to vector<2x32xf32>
    %85 = arith.addf %84, %83 : vector<2x32xf32>
    %86 = arith.divf %84, %85 : vector<2x32xf32>
    %87 = arith.mulf %86, %63 : vector<2x32xf32>
    %cst_54 = arith.constant 1.000000e+00 : f32
    %88 = vector.broadcast %cst_54 : f32 to vector<2x32xf32>
    %89 = arith.subf %88, %86 : vector<2x32xf32>
    %90 = arith.index_cast %c1_i32 : i32 to index
    %c0_55 = arith.constant 0 : index
    %c0_56 = arith.constant 0 : index
    %91 = vector.load %arg9[%90, %c0_55, %c0_56] : memref<8x2x32xf32, #tpu.memory_space<vmem>>, vector<1x2x32xf32>
    %92 = vector.shape_cast %91 : vector<1x2x32xf32> to vector<2x32xf32>
    %93 = arith.mulf %76, %63 : vector<2x32xf32>
    %94 = arith.addf %92, %93 : vector<2x32xf32>
    %95 = math.tanh %94 : vector<2x32xf32>
    %96 = arith.mulf %89, %95 : vector<2x32xf32>
    %97 = arith.addf %87, %96 : vector<2x32xf32>
    %98 = arith.index_cast %c1_i32 : i32 to index
    %c0_57 = arith.constant 0 : index
    %c0_58 = arith.constant 0 : index
    %99 = vector.load %arg6[%98, %c0_57, %c0_58] : memref<8x2x32xf32, #tpu.memory_space<vmem>>, vector<1x2x32xf32>
    %100 = vector.shape_cast %99 : vector<1x2x32xf32> to vector<2x32xf32>
    %101 = vector.shape_cast %97 : vector<2x32xf32> to vector<1x2x32xf32>
    tpu.vector_store %arg6[%98, %c0_57, %c0_58], %101 {strides = array<i32>} : memref<8x2x32xf32, #tpu.memory_space<vmem>>, vector<1x2x32xf32>,
    %c2_i32 = arith.constant 2 : i32
    %cst_59 = arith.constant dense<0.000000e+00> : vector<2x64xf32>
    %102 = tpu.matmul %97, %32, %cst_59 {dimension_numbers = #tpu.dot_dimension_numbers<[1], [0], [0], [1], [0, 0, 1, 1], [], []>} : vector<2x32xf32>, vector<32x64xf32>, vector<2x64xf32> -> vector<2x64xf32>
    %103 = arith.index_cast %c2_i32 : i32 to index
    %c0_60 = arith.constant 0 : index
    %c0_61 = arith.constant 0 : index
    %104 = vector.load %arg7[%103, %c0_60, %c0_61] : memref<8x2x32xf32, #tpu.memory_space<vmem>>, vector<1x2x32xf32>
    %105 = vector.shape_cast %104 : vector<1x2x32xf32> to vector<2x32xf32>
    %106 = vector.extract_strided_slice %102 {offsets = [0, 0], sizes = [2, 32], strides = [1, 1]} : vector<2x64xf32> to vector<2x32xf32>
    %107 = arith.addf %105, %106 : vector<2x32xf32>
    %108 = math.tanh %107 : vector<2x32xf32>
    %cst_62 = arith.constant 1.000000e+00 : f32
    %109 = vector.broadcast %cst_62 : f32 to vector<2x32xf32>
    %110 = arith.addf %109, %108 : vector<2x32xf32>
    %111 = arith.index_cast %c2_i32 : i32 to index
    %c0_63 = arith.constant 0 : index
    %c0_64 = arith.constant 0 : index
    %112 = vector.load %arg8[%111, %c0_63, %c0_64] : memref<8x2x32xf32, #tpu.memory_space<vmem>>, vector<1x2x32xf32>
    %113 = vector.shape_cast %112 : vector<1x2x32xf32> to vector<2x32xf32>
    %114 = vector.extract_strided_slice %102 {offsets = [0, 32], sizes = [2, 32], strides = [1, 1]} : vector<2x64xf32> to vector<2x32xf32>
    %115 = arith.addf %113, %114 : vector<2x32xf32>
    %116 = arith.negf %115 : vector<2x32xf32>
    %117 = math.exp %116 : vector<2x32xf32>
    %cst_65 = arith.constant 1.000000e+00 : f32
    %118 = vector.broadcast %cst_65 : f32 to vector<2x32xf32>
    %119 = arith.addf %118, %117 : vector<2x32xf32>
    %120 = arith.divf %118, %119 : vector<2x32xf32>
    %121 = arith.mulf %120, %97 : vector<2x32xf32>
    %cst_66 = arith.constant 1.000000e+00 : f32
    %122 = vector.broadcast %cst_66 : f32 to vector<2x32xf32>
    %123 = arith.subf %122, %120 : vector<2x32xf32>
    %124 = arith.index_cast %c2_i32 : i32 to index
    %c0_67 = arith.constant 0 : index
    %c0_68 = arith.constant 0 : index
    %125 = vector.load %arg9[%124, %c0_67, %c0_68] : memref<8x2x32xf32, #tpu.memory_space<vmem>>, vector<1x2x32xf32>
    %126 = vector.shape_cast %125 : vector<1x2x32xf32> to vector<2x32xf32>
    %127 = arith.mulf %110, %97 : vector<2x32xf32>
    %128 = arith.addf %126, %127 : vector<2x32xf32>
    %129 = math.tanh %128 : vector<2x32xf32>
    %130 = arith.mulf %123, %129 : vector<2x32xf32>
    %131 = arith.addf %121, %130 : vector<2x32xf32>
    %132 = arith.index_cast %c2_i32 : i32 to index
    %c0_69 = arith.constant 0 : index
    %c0_70 = arith.constant 0 : index
    %133 = vector.load %arg6[%132, %c0_69, %c0_70] : memref<8x2x32xf32, #tpu.memory_space<vmem>>, vector<1x2x32xf32>
    %134 = vector.shape_cast %133 : vector<1x2x32xf32> to vector<2x32xf32>
    %135 = vector.shape_cast %131 : vector<2x32xf32> to vector<1x2x32xf32>
    tpu.vector_store %arg6[%132, %c0_69, %c0_70], %135 {strides = array<i32>} : memref<8x2x32xf32, #tpu.memory_space<vmem>>, vector<1x2x32xf32>,
    %c3_i32 = arith.constant 3 : i32
    %cst_71 = arith.constant dense<0.000000e+00> : vector<2x64xf32>
    %136 = tpu.matmul %131, %32, %cst_71 {dimension_numbers = #tpu.dot_dimension_numbers<[1], [0], [0], [1], [0, 0, 1, 1], [], []>} : vector<2x32xf32>, vector<32x64xf32>, vector<2x64xf32> -> vector<2x64xf32>
    %137 = arith.index_cast %c3_i32 : i32 to index
    %c0_72 = arith.constant 0 : index
    %c0_73 = arith.constant 0 : index
    %138 = vector.load %arg7[%137, %c0_72, %c0_73] : memref<8x2x32xf32, #tpu.memory_space<vmem>>, vector<1x2x32xf32>
    %139 = vector.shape_cast %138 : vector<1x2x32xf32> to vector<2x32xf32>
    %140 = vector.extract_strided_slice %136 {offsets = [0, 0], sizes = [2, 32], strides = [1, 1]} : vector<2x64xf32> to vector<2x32xf32>
    %141 = arith.addf %139, %140 : vector<2x32xf32>
    %142 = math.tanh %141 : vector<2x32xf32>
    %cst_74 = arith.constant 1.000000e+00 : f32
    %143 = vector.broadcast %cst_74 : f32 to vector<2x32xf32>
    %144 = arith.addf %143, %142 : vector<2x32xf32>
    %145 = arith.index_cast %c3_i32 : i32 to index
    %c0_75 = arith.constant 0 : index
    %c0_76 = arith.constant 0 : index
    %146 = vector.load %arg8[%145, %c0_75, %c0_76] : memref<8x2x32xf32, #tpu.memory_space<vmem>>, vector<1x2x32xf32>
    %147 = vector.shape_cast %146 : vector<1x2x32xf32> to vector<2x32xf32>
    %148 = vector.extract_strided_slice %136 {offsets = [0, 32], sizes = [2, 32], strides = [1, 1]} : vector<2x64xf32> to vector<2x32xf32>
    %149 = arith.addf %147, %148 : vector<2x32xf32>
    %150 = arith.negf %149 : vector<2x32xf32>
    %151 = math.exp %150 : vector<2x32xf32>
    %cst_77 = arith.constant 1.000000e+00 : f32
    %152 = vector.broadcast %cst_77 : f32 to vector<2x32xf32>
    %153 = arith.addf %152, %151 : vector<2x32xf32>
    %154 = arith.divf %152, %153 : vector<2x32xf32>
    %155 = arith.mulf %154, %131 : vector<2x32xf32>
    %cst_78 = arith.constant 1.000000e+00 : f32
    %156 = vector.broadcast %cst_78 : f32 to vector<2x32xf32>
    %157 = arith.subf %156, %154 : vector<2x32xf32>
    %158 = arith.index_cast %c3_i32 : i32 to index
    %c0_79 = arith.constant 0 : index
    %c0_80 = arith.constant 0 : index
    %159 = vector.load %arg9[%158, %c0_79, %c0_80] : memref<8x2x32xf32, #tpu.memory_space<vmem>>, vector<1x2x32xf32>
    %160 = vector.shape_cast %159 : vector<1x2x32xf32> to vector<2x32xf32>
    %161 = arith.mulf %144, %131 : vector<2x32xf32>
    %162 = arith.addf %160, %161 : vector<2x32xf32>
    %163 = math.tanh %162 : vector<2x32xf32>
    %164 = arith.mulf %157, %163 : vector<2x32xf32>
    %165 = arith.addf %155, %164 : vector<2x32xf32>
    %166 = arith.index_cast %c3_i32 : i32 to index
    %c0_81 = arith.constant 0 : index
    %c0_82 = arith.constant 0 : index
    %167 = vector.load %arg6[%166, %c0_81, %c0_82] : memref<8x2x32xf32, #tpu.memory_space<vmem>>, vector<1x2x32xf32>
    %168 = vector.shape_cast %167 : vector<1x2x32xf32> to vector<2x32xf32>
    %169 = vector.shape_cast %165 : vector<2x32xf32> to vector<1x2x32xf32>
    tpu.vector_store %arg6[%166, %c0_81, %c0_82], %169 {strides = array<i32>} : memref<8x2x32xf32, #tpu.memory_space<vmem>>, vector<1x2x32xf32>,
    %c4_i32 = arith.constant 4 : i32
    %cst_83 = arith.constant dense<0.000000e+00> : vector<2x64xf32>
    %170 = tpu.matmul %165, %32, %cst_83 {dimension_numbers = #tpu.dot_dimension_numbers<[1], [0], [0], [1], [0, 0, 1, 1], [], []>} : vector<2x32xf32>, vector<32x64xf32>, vector<2x64xf32> -> vector<2x64xf32>
    %171 = arith.index_cast %c4_i32 : i32 to index
    %c0_84 = arith.constant 0 : index
    %c0_85 = arith.constant 0 : index
    %172 = vector.load %arg7[%171, %c0_84, %c0_85] : memref<8x2x32xf32, #tpu.memory_space<vmem>>, vector<1x2x32xf32>
    %173 = vector.shape_cast %172 : vector<1x2x32xf32> to vector<2x32xf32>
    %174 = vector.extract_strided_slice %170 {offsets = [0, 0], sizes = [2, 32], strides = [1, 1]} : vector<2x64xf32> to vector<2x32xf32>
    %175 = arith.addf %173, %174 : vector<2x32xf32>
    %176 = math.tanh %175 : vector<2x32xf32>
    %cst_86 = arith.constant 1.000000e+00 : f32
    %177 = vector.broadcast %cst_86 : f32 to vector<2x32xf32>
    %178 = arith.addf %177, %176 : vector<2x32xf32>
    %179 = arith.index_cast %c4_i32 : i32 to index
    %c0_87 = arith.constant 0 : index
    %c0_88 = arith.constant 0 : index
    %180 = vector.load %arg8[%179, %c0_87, %c0_88] : memref<8x2x32xf32, #tpu.memory_space<vmem>>, vector<1x2x32xf32>
    %181 = vector.shape_cast %180 : vector<1x2x32xf32> to vector<2x32xf32>
    %182 = vector.extract_strided_slice %170 {offsets = [0, 32], sizes = [2, 32], strides = [1, 1]} : vector<2x64xf32> to vector<2x32xf32>
    %183 = arith.addf %181, %182 : vector<2x32xf32>
    %184 = arith.negf %183 : vector<2x32xf32>
    %185 = math.exp %184 : vector<2x32xf32>
    %cst_89 = arith.constant 1.000000e+00 : f32
    %186 = vector.broadcast %cst_89 : f32 to vector<2x32xf32>
    %187 = arith.addf %186, %185 : vector<2x32xf32>
    %188 = arith.divf %186, %187 : vector<2x32xf32>
    %189 = arith.mulf %188, %165 : vector<2x32xf32>
    %cst_90 = arith.constant 1.000000e+00 : f32
    %190 = vector.broadcast %cst_90 : f32 to vector<2x32xf32>
    %191 = arith.subf %190, %188 : vector<2x32xf32>
    %192 = arith.index_cast %c4_i32 : i32 to index
    %c0_91 = arith.constant 0 : index
    %c0_92 = arith.constant 0 : index
    %193 = vector.load %arg9[%192, %c0_91, %c0_92] : memref<8x2x32xf32, #tpu.memory_space<vmem>>, vector<1x2x32xf32>
    %194 = vector.shape_cast %193 : vector<1x2x32xf32> to vector<2x32xf32>
    %195 = arith.mulf %178, %165 : vector<2x32xf32>
    %196 = arith.addf %194, %195 : vector<2x32xf32>
    %197 = math.tanh %196 : vector<2x32xf32>
    %198 = arith.mulf %191, %197 : vector<2x32xf32>
    %199 = arith.addf %189, %198 : vector<2x32xf32>
    %200 = arith.index_cast %c4_i32 : i32 to index
    %c0_93 = arith.constant 0 : index
    %c0_94 = arith.constant 0 : index
    %201 = vector.load %arg6[%200, %c0_93, %c0_94] : memref<8x2x32xf32, #tpu.memory_space<vmem>>, vector<1x2x32xf32>
    %202 = vector.shape_cast %201 : vector<1x2x32xf32> to vector<2x32xf32>
    %203 = vector.shape_cast %199 : vector<2x32xf32> to vector<1x2x32xf32>
    tpu.vector_store %arg6[%200, %c0_93, %c0_94], %203 {strides = array<i32>} : memref<8x2x32xf32, #tpu.memory_space<vmem>>, vector<1x2x32xf32>,
    %c5_i32 = arith.constant 5 : i32
    %cst_95 = arith.constant dense<0.000000e+00> : vector<2x64xf32>
    %204 = tpu.matmul %199, %32, %cst_95 {dimension_numbers = #tpu.dot_dimension_numbers<[1], [0], [0], [1], [0, 0, 1, 1], [], []>} : vector<2x32xf32>, vector<32x64xf32>, vector<2x64xf32> -> vector<2x64xf32>
    %205 = arith.index_cast %c5_i32 : i32 to index
    %c0_96 = arith.constant 0 : index
    %c0_97 = arith.constant 0 : index
    %206 = vector.load %arg7[%205, %c0_96, %c0_97] : memref<8x2x32xf32, #tpu.memory_space<vmem>>, vector<1x2x32xf32>
    %207 = vector.shape_cast %206 : vector<1x2x32xf32> to vector<2x32xf32>
    %208 = vector.extract_strided_slice %204 {offsets = [0, 0], sizes = [2, 32], strides = [1, 1]} : vector<2x64xf32> to vector<2x32xf32>
    %209 = arith.addf %207, %208 : vector<2x32xf32>
    %210 = math.tanh %209 : vector<2x32xf32>
    %cst_98 = arith.constant 1.000000e+00 : f32
    %211 = vector.broadcast %cst_98 : f32 to vector<2x32xf32>
    %212 = arith.addf %211, %210 : vector<2x32xf32>
    %213 = arith.index_cast %c5_i32 : i32 to index
    %c0_99 = arith.constant 0 : index
    %c0_100 = arith.constant 0 : index
    %214 = vector.load %arg8[%213, %c0_99, %c0_100] : memref<8x2x32xf32, #tpu.memory_space<vmem>>, vector<1x2x32xf32>
    %215 = vector.shape_cast %214 : vector<1x2x32xf32> to vector<2x32xf32>
    %216 = vector.extract_strided_slice %204 {offsets = [0, 32], sizes = [2, 32], strides = [1, 1]} : vector<2x64xf32> to vector<2x32xf32>
    %217 = arith.addf %215, %216 : vector<2x32xf32>
    %218 = arith.negf %217 : vector<2x32xf32>
    %219 = math.exp %218 : vector<2x32xf32>
    %cst_101 = arith.constant 1.000000e+00 : f32
    %220 = vector.broadcast %cst_101 : f32 to vector<2x32xf32>
    %221 = arith.addf %220, %219 : vector<2x32xf32>
    %222 = arith.divf %220, %221 : vector<2x32xf32>
    %223 = arith.mulf %222, %199 : vector<2x32xf32>
    %cst_102 = arith.constant 1.000000e+00 : f32
    %224 = vector.broadcast %cst_102 : f32 to vector<2x32xf32>
    %225 = arith.subf %224, %222 : vector<2x32xf32>
    %226 = arith.index_cast %c5_i32 : i32 to index
    %c0_103 = arith.constant 0 : index
    %c0_104 = arith.constant 0 : index
    %227 = vector.load %arg9[%226, %c0_103, %c0_104] : memref<8x2x32xf32, #tpu.memory_space<vmem>>, vector<1x2x32xf32>
    %228 = vector.shape_cast %227 : vector<1x2x32xf32> to vector<2x32xf32>
    %229 = arith.mulf %212, %199 : vector<2x32xf32>
    %230 = arith.addf %228, %229 : vector<2x32xf32>
    %231 = math.tanh %230 : vector<2x32xf32>
    %232 = arith.mulf %225, %231 : vector<2x32xf32>
    %233 = arith.addf %223, %232 : vector<2x32xf32>
    %234 = arith.index_cast %c5_i32 : i32 to index
    %c0_105 = arith.constant 0 : index
    %c0_106 = arith.constant 0 : index
    %235 = vector.load %arg6[%234, %c0_105, %c0_106] : memref<8x2x32xf32, #tpu.memory_space<vmem>>, vector<1x2x32xf32>
    %236 = vector.shape_cast %235 : vector<1x2x32xf32> to vector<2x32xf32>
    %237 = vector.shape_cast %233 : vector<2x32xf32> to vector<1x2x32xf32>
    tpu.vector_store %arg6[%234, %c0_105, %c0_106], %237 {strides = array<i32>} : memref<8x2x32xf32, #tpu.memory_space<vmem>>, vector<1x2x32xf32>,
    %c6_i32 = arith.constant 6 : i32
    %cst_107 = arith.constant dense<0.000000e+00> : vector<2x64xf32>
    %238 = tpu.matmul %233, %32, %cst_107 {dimension_numbers = #tpu.dot_dimension_numbers<[1], [0], [0], [1], [0, 0, 1, 1], [], []>} : vector<2x32xf32>, vector<32x64xf32>, vector<2x64xf32> -> vector<2x64xf32>
    %239 = arith.index_cast %c6_i32 : i32 to index
    %c0_108 = arith.constant 0 : index
    %c0_109 = arith.constant 0 : index
    %240 = vector.load %arg7[%239, %c0_108, %c0_109] : memref<8x2x32xf32, #tpu.memory_space<vmem>>, vector<1x2x32xf32>
    %241 = vector.shape_cast %240 : vector<1x2x32xf32> to vector<2x32xf32>
    %242 = vector.extract_strided_slice %238 {offsets = [0, 0], sizes = [2, 32], strides = [1, 1]} : vector<2x64xf32> to vector<2x32xf32>
    %243 = arith.addf %241, %242 : vector<2x32xf32>
    %244 = math.tanh %243 : vector<2x32xf32>
    %cst_110 = arith.constant 1.000000e+00 : f32
    %245 = vector.broadcast %cst_110 : f32 to vector<2x32xf32>
    %246 = arith.addf %245, %244 : vector<2x32xf32>
    %247 = arith.index_cast %c6_i32 : i32 to index
    %c0_111 = arith.constant 0 : index
    %c0_112 = arith.constant 0 : index
    %248 = vector.load %arg8[%247, %c0_111, %c0_112] : memref<8x2x32xf32, #tpu.memory_space<vmem>>, vector<1x2x32xf32>
    %249 = vector.shape_cast %248 : vector<1x2x32xf32> to vector<2x32xf32>
    %250 = vector.extract_strided_slice %238 {offsets = [0, 32], sizes = [2, 32], strides = [1, 1]} : vector<2x64xf32> to vector<2x32xf32>
    %251 = arith.addf %249, %250 : vector<2x32xf32>
    %252 = arith.negf %251 : vector<2x32xf32>
    %253 = math.exp %252 : vector<2x32xf32>
    %cst_113 = arith.constant 1.000000e+00 : f32
    %254 = vector.broadcast %cst_113 : f32 to vector<2x32xf32>
    %255 = arith.addf %254, %253 : vector<2x32xf32>
    %256 = arith.divf %254, %255 : vector<2x32xf32>
    %257 = arith.mulf %256, %233 : vector<2x32xf32>
    %cst_114 = arith.constant 1.000000e+00 : f32
    %258 = vector.broadcast %cst_114 : f32 to vector<2x32xf32>
    %259 = arith.subf %258, %256 : vector<2x32xf32>
    %260 = arith.index_cast %c6_i32 : i32 to index
    %c0_115 = arith.constant 0 : index
    %c0_116 = arith.constant 0 : index
    %261 = vector.load %arg9[%260, %c0_115, %c0_116] : memref<8x2x32xf32, #tpu.memory_space<vmem>>, vector<1x2x32xf32>
    %262 = vector.shape_cast %261 : vector<1x2x32xf32> to vector<2x32xf32>
    %263 = arith.mulf %246, %233 : vector<2x32xf32>
    %264 = arith.addf %262, %263 : vector<2x32xf32>
    %265 = math.tanh %264 : vector<2x32xf32>
    %266 = arith.mulf %259, %265 : vector<2x32xf32>
    %267 = arith.addf %257, %266 : vector<2x32xf32>
    %268 = arith.index_cast %c6_i32 : i32 to index
    %c0_117 = arith.constant 0 : index
    %c0_118 = arith.constant 0 : index
    %269 = vector.load %arg6[%268, %c0_117, %c0_118] : memref<8x2x32xf32, #tpu.memory_space<vmem>>, vector<1x2x32xf32>
    %270 = vector.shape_cast %269 : vector<1x2x32xf32> to vector<2x32xf32>
    %271 = vector.shape_cast %267 : vector<2x32xf32> to vector<1x2x32xf32>
    tpu.vector_store %arg6[%268, %c0_117, %c0_118], %271 {strides = array<i32>} : memref<8x2x32xf32, #tpu.memory_space<vmem>>, vector<1x2x32xf32>,
    %c7_i32 = arith.constant 7 : i32
    %cst_119 = arith.constant dense<0.000000e+00> : vector<2x64xf32>
    %272 = tpu.matmul %267, %32, %cst_119 {dimension_numbers = #tpu.dot_dimension_numbers<[1], [0], [0], [1], [0, 0, 1, 1], [], []>} : vector<2x32xf32>, vector<32x64xf32>, vector<2x64xf32> -> vector<2x64xf32>
    %273 = arith.index_cast %c7_i32 : i32 to index
    %c0_120 = arith.constant 0 : index
    %c0_121 = arith.constant 0 : index
    %274 = vector.load %arg7[%273, %c0_120, %c0_121] : memref<8x2x32xf32, #tpu.memory_space<vmem>>, vector<1x2x32xf32>
    %275 = vector.shape_cast %274 : vector<1x2x32xf32> to vector<2x32xf32>
    %276 = vector.extract_strided_slice %272 {offsets = [0, 0], sizes = [2, 32], strides = [1, 1]} : vector<2x64xf32> to vector<2x32xf32>
    %277 = arith.addf %275, %276 : vector<2x32xf32>
    %278 = math.tanh %277 : vector<2x32xf32>
    %cst_122 = arith.constant 1.000000e+00 : f32
    %279 = vector.broadcast %cst_122 : f32 to vector<2x32xf32>
    %280 = arith.addf %279, %278 : vector<2x32xf32>
    %281 = arith.index_cast %c7_i32 : i32 to index
    %c0_123 = arith.constant 0 : index
    %c0_124 = arith.constant 0 : index
    %282 = vector.load %arg8[%281, %c0_123, %c0_124] : memref<8x2x32xf32, #tpu.memory_space<vmem>>, vector<1x2x32xf32>
    %283 = vector.shape_cast %282 : vector<1x2x32xf32> to vector<2x32xf32>
    %284 = vector.extract_strided_slice %272 {offsets = [0, 32], sizes = [2, 32], strides = [1, 1]} : vector<2x64xf32> to vector<2x32xf32>
    %285 = arith.addf %283, %284 : vector<2x32xf32>
    %286 = arith.negf %285 : vector<2x32xf32>
    %287 = math.exp %286 : vector<2x32xf32>
    %cst_125 = arith.constant 1.000000e+00 : f32
    %288 = vector.broadcast %cst_125 : f32 to vector<2x32xf32>
    %289 = arith.addf %288, %287 : vector<2x32xf32>
    %290 = arith.divf %288, %289 : vector<2x32xf32>
    %291 = arith.mulf %290, %267 : vector<2x32xf32>
    %cst_126 = arith.constant 1.000000e+00 : f32
    %292 = vector.broadcast %cst_126 : f32 to vector<2x32xf32>
    %293 = arith.subf %292, %290 : vector<2x32xf32>
    %294 = arith.index_cast %c7_i32 : i32 to index
    %c0_127 = arith.constant 0 : index
    %c0_128 = arith.constant 0 : index
    %295 = vector.load %arg9[%294, %c0_127, %c0_128] : memref<8x2x32xf32, #tpu.memory_space<vmem>>, vector<1x2x32xf32>
    %296 = vector.shape_cast %295 : vector<1x2x32xf32> to vector<2x32xf32>
    %297 = arith.mulf %280, %267 : vector<2x32xf32>
    %298 = arith.addf %296, %297 : vector<2x32xf32>
    %299 = math.tanh %298 : vector<2x32xf32>
    %300 = arith.mulf %293, %299 : vector<2x32xf32>
    %301 = arith.addf %291, %300 : vector<2x32xf32>
    %302 = arith.index_cast %c7_i32 : i32 to index
    %c0_129 = arith.constant 0 : index
    %c0_130 = arith.constant 0 : index
    %303 = vector.load %arg6[%302, %c0_129, %c0_130] : memref<8x2x32xf32, #tpu.memory_space<vmem>>, vector<1x2x32xf32>
    %304 = vector.shape_cast %303 : vector<1x2x32xf32> to vector<2x32xf32>
    %305 = vector.shape_cast %301 : vector<2x32xf32> to vector<1x2x32xf32>
    tpu.vector_store %arg6[%302, %c0_129, %c0_130], %305 {strides = array<i32>} : memref<8x2x32xf32, #tpu.memory_space<vmem>>, vector<1x2x32xf32>,
    %c8_i32 = arith.constant 8 : i32
    %c0_131 = arith.constant 0 : index
    %c0_132 = arith.constant 0 : index
    %306 = vector.load %arg10[%c0_131, %c0_132] : memref<2x32xf32, #tpu.memory_space<vmem>>, vector<2x32xf32>
    tpu.vector_store %arg10[%c0_131, %c0_132], %301 {strides = array<i32>} : memref<2x32xf32, #tpu.memory_space<vmem>>, vector<2x32xf32>,
    return
  }
  func.func @transform_0(%arg0: i32, %arg1: i32) -> (i32, i32, i32) {
    %c0_i32 = arith.constant 0 : i32
    %c0_i32_0 = arith.constant 0 : i32
    return %arg1, %arg0, %c0_i32 : i32, i32, i32
  }
  func.func @transform_1(%arg0: i32, %arg1: i32) -> (i32, i32, i32) {
    %c0_i32 = arith.constant 0 : i32
    %c0_i32_0 = arith.constant 0 : i32
    %c0_i32_1 = arith.constant 0 : i32
    %c0_i32_2 = arith.constant 0 : i32
    return %c0_i32, %c0_i32_0, %c0_i32_1 : i32, i32, i32
  }
  func.func @transform_2(%arg0: i32, %arg1: i32) -> (i32, i32, i32) {
    %c0_i32 = arith.constant 0 : i32
    %c0_i32_0 = arith.constant 0 : i32
    %c0_i32_1 = arith.constant 0 : i32
    %c0_i32_2 = arith.constant 0 : i32
    return %c0_i32, %c0_i32_0, %c0_i32_1 : i32, i32, i32
  }
  func.func @transform_3(%arg0: i32, %arg1: i32) -> (i32, i32) {
    %c0_i32 = arith.constant 0 : i32
    %c0_i32_0 = arith.constant 0 : i32
    %c0_i32_1 = arith.constant 0 : i32
    return %c0_i32, %c0_i32_0 : i32, i32
  }
  func.func @transform_4(%arg0: i32, %arg1: i32) -> (i32, i32, i32) {
    %c0_i32 = arith.constant 0 : i32
    %c0_i32_0 = arith.constant 0 : i32
    return %arg1, %arg0, %c0_i32 : i32, i32, i32
  }
}

</mosaic_0001>

<bundles_post_ra>
// kernel: nbrc_model_forward.5
= control target key start
LH: loop header
LB: loop body
LE: loop exit
PB: predicated region body
PF: predicated region fallthrough
CT: control target
= control target key end

     0   :  { %vm27_vm0 = vcmask 261120   ;;  %vm109_vm1 = vcmask 64512   ;;  %s191_s1 = inlined_call_operand.vmem [shape: f32[32,8], index: 1, kind: input, shape index: {}]   ;;  %s192_s0 = inlined_call_operand.vmem [shape: f32[16,32], index: 0, kind: input, shape index: {}]   ;;  %s193_s2 = inlined_call_operand.vmem [shape: f32[1,8], index: 2, kind: input, shape index: {}]   ;;  %s194_s3 = inlined_call_operand.vmem [shape: f32[16,8], index: 3, kind: output, shape index: {}]  }
   0x1   :  { %v16_v0 = vld [vmem:[%s191_s1] sm:$0xff]  ;;  %v17_v1 = vld [vmem:[%s191_s1 + $0x8] sm:$0xff]  ;;  %v18_v2 = vld [vmem:[%s191_s1 + $0x10] sm:$0xff] }
   0x2   :  { %v136_v3 = vpack.c.bf16 %v17_v1, %v16_v0  ;;  %v19_v4 = vld [vmem:[%s191_s1 + $0x18] sm:$0xff]  ;;  %v14_v5 = vld [vmem:[%s192_s0] sm:$0xff]  ;;  %v15_v7 = vld [vmem:[%s192_s0 + $0x8] sm:$0xff] }
   0x3   :  { %v140_v6 = vpack.c.bf16 %v19_v4, %v18_v2  ;;  %133 = vmatprep.mubr.msk.f32.mxu0 %vm27_vm0, %v14_v5  ;;  %v116_v8 = vld [vmem:[%s193_s2] ss:$0 sm:$0xff] }
   0x4   :  { %137 = vmatprep.subr.bf16.mxu0 %v136_v3 }
   0x5   :  { %139 = vmatpush3.bf16.msra.mxu0 %v136_v3 }
   0x6   :  { %141 = vmatprep.subr.bf16.mxu0 %v140_v6 }
   0x9   :  { %143 = vmatpush3.bf16.msra.mxu0 %v140_v6 }
   0xc   :  { %134 = vmatmul.mubr.msk.f32.vlgmr.msra.gmra.mrb[0].mxu0 %vm27_vm0, %v15_v7 }
  0xdf   :  { %v135_v9 = vpop.f32.mrb[0].mxu0 }
  0xe0   :  { %v106_v10 = vadd.f32 %v135_v9, %v116_v8  ;;  %v100_v11 = vpop.f32.mrb[1].mxu0 }
  0xe1   :  { %v101_v12 = vadd.f32 %v116_v8, %v100_v11 }
  0xe2   :  { %111 = vst.msk [vmem:[%s194_s3 + $0x8] sm:$0xff] %vm109_vm1, %v106_v10 }
  0xe3   :  { %110 = vst.msk [vmem:[%s194_s3] sm:$0xff] %vm109_vm1, %v101_v12 }

// kernel: nbrc_model_forward.3
= control target key start
LH: loop header
LB: loop body
LE: loop exit
PB: predicated region body
PF: predicated region fallthrough
CT: control target
= control target key end

     0   :  { %vm86_vm0 = vcmask 1043456   ;;  %v52_v0 = vlaneseq  ;;  %v1629_v4 = vmov 1983009808   ;;  %v1630_v19 = vmov 0.0|0.0   ;;  %s1875_s1 = inlined_call_operand.vmem [shape: f32[3,4,32], index: 1, kind: input, shape index: {}]   ;;  %s1876_s0 = inlined_call_operand.vmem [shape: f32[8,2,4], index: 0, kind: input, shape index: {}]   ;;  %s1877_s3 = inlined_call_operand.vmem [shape: f32[32,64], index: 3, kind: input, shape index: {}]   ;;  %s1878_s2 = inlined_call_operand.vmem [shape: f32[3,1,32], index: 2, kind: input, shape index: {}]   ;;  %s1879_s4 = inlined_call_operand.vmem [shape: f32[8,2,32], index: 4, kind: output, shape index: {}]  }
   0x1   :  { %v1325_v1 = vld [vmem:[%s1875_s1 + $0x4] sm:$0xf]  ;;  %v31_v2 = vld [vmem:[%s1875_s1] sm:$0xf]  ;;  %v50_v5 = vunpack.c.l.s4 %v1629_v4  ;;  %v27_v13 = vld [vmem:[%s1876_s0 + $0x8] sm:$0x3] }
   0x2   :  { %v23_v3 = vld [vmem:[%s1876_s0] sm:$0x3]  ;;  %1414 = vmatprep.subr.msk.mxu1 %vm86_vm0, %v1325_v1  ;;  %1409 = vmatprep.subr.msk.mxu0 %vm86_vm0, %v31_v2  ;;  %v24_v6 = vld [vmem:[%s1876_s0 + $0x2] sm:$0x3]  ;;  %v25_v7 = vld [vmem:[%s1876_s0 + $0x4] sm:$0x3] }
   0x3   :  { %v26_v8 = vld [vmem:[%s1876_s0 + $0x6] sm:$0x3]  ;;  %1415 = vmatpush3.msk.msra.mxu1 %vm86_vm0, %v1325_v1  ;;  %1410 = vmatpush3.msk.msra.mxu0 %vm86_vm0, %v31_v2  ;;  %v47_v9 = vcombine.low %v23_v3, %v24_v6  ;;  %v51_v11 = vunpack.c.0.s8 %v50_v5  ;;  %v53_v12 = vshrl.u32 %v52_v0, 7  ;;  %v28_v14 = vld [vmem:[%s1876_s0 + $0xa] sm:$0x3]  ;;  %vm21_vm1 = vcmask 254976  }
   0x4   :  { %v48_v10 = vcombine.low %v25_v7, %v26_v8  ;;  %v29_v15 = vld [vmem:[%s1876_s0 + $0xc] sm:$0x3]  ;;  %v30_v16 = vld [vmem:[%s1876_s0 + $0xe] sm:$0x3]  ;;  %v64_v17 = vcombine.low %v27_v13, %v28_v14  ;;  %1512 = vmatprep.subr.bf16.mxu1 %v1630_v19  ;;  %v1331_v21 = vld [vmem:[%s1875_s1 + $0x8] sm:$0xf] }
   0x5   :  { %v1693_v18 = vsub.s32 %v51_v11, %v53_v12  ;;  %v65_v20 = vcombine.low %v29_v15, %v30_v16  ;;  %v498_v22 = vld [vmem:[%s1877_s3] sm:$0xff]  ;;  %v499_v23 = vld [vmem:[%s1877_s3 + $0x8] sm:$0xff]  ;;  %1419 = vmatprep.subr.msk.mxu0 %vm86_vm0, %v1331_v21  ;;  %v1631_v28 = vmov 0.0   ;;  %vm81_vm2 = vcmask 31744   ;;  %v500_v32 = vld [vmem:[%s1877_s3 + $0x10] sm:$0xff] }
   0x6   :  { %22 = vst.msk [vmem:[#allocation5] sm:$0x3] %vm21_vm1, %v1631_v28  ;;  %v1712_v31 = vpack.c.bf16 %v499_v23, %v498_v22  ;;  %v501_v33 = vld [vmem:[%s1877_s3 + $0x18] sm:$0xff]  ;;  %vm1632_vm3 = vmmov 0   ;;  %vm503_vm4 = vcmask 261120  }
   0x7   :  { %v55_v24 = vrot.slane %v47_v9, %v1693_v18  ;;  %v62_v25 = vrot.slane %v48_v10, %v1693_v18  ;;  %v72_v26 = vrot.slane %v64_v17, %v1693_v18  ;;  %v79_v27 = vrot.slane %v65_v20, %v1693_v18  ;;  %v1327_v36 = vld [vmem:[%s1878_s2 + $0x1] ss:$0 sm:$0xff]  ;;  %v1321_v37 = vld [vmem:[%s1878_s2] ss:$0 sm:$0xff]  ;;  %v1333_v55 = vld [vmem:[%s1878_s2 + $0x2] ss:$0 sm:$0xff] }
   0x8   :  { %v1725_v34 = vpack.c.bf16 %v501_v33, %v500_v32  ;;  %s1633_s2 = smov 96  }
   0x9   :  { %v63_v29 = vcombine.low %v55_v24, %v62_v25  ;;  %v80_v30 = vcombine.low %v72_v26, %v79_v27 }
   0xb   :  { %1411 = vmatprep.mubr.msk.f32.mxu0 %vm81_vm2, %v63_v29  ;;  %1416 = vmatprep.mubr.msk.f32.mxu1 %vm81_vm2, %v63_v29 }
   0xc   :  { %1412 = vmatmul.mubr.msk.f32.vlgmr.msra.gmra.mrb[0].mxu0 %vm81_vm2, %v80_v30  ;;  %1417 = vmatmul.mubr.msk.f32.vlgmr.msra.gmra.mrb[0].mxu1 %vm81_vm2, %v80_v30 }
   0xd   :  { %1514 = vmatpush3.bf16.msra.mxu1 %v1712_v31  ;;  %1432 = vmatprep.mubr.msk.f32.mxu1 %vm1632_vm3, %v1631_v28  ;;  %v1735_v35 = vld [vmem:[#allocation5] sm:$0x3] }
   0xe   :  { %1515 = vmatprep.subr.bf16.mxu1 %v1630_v19  ;;  %1420 = vmatpush3.msk.msra.mxu0 %vm86_vm0, %v1331_v21 }
   0xf   :  { %1421 = vmatprep.mubr.msk.f32.mxu0 %vm81_vm2, %v63_v29  ;;  %1518 = vmatprep.subr.bf16.mxu0 %v1630_v19 }
  0x10   :  { %1422 = vmatmul.mubr.msk.f32.vlgmr.msra.gmra.mrb[2].mxu0 %vm81_vm2, %v80_v30 }
  0x11   :  { %1517 = vmatpush3.bf16.msra.mxu1 %v1725_v34  ;;  %1520 = vmatpush3.bf16.msra.mxu0 %v1712_v31 }
  0x12   :  { %1521 = vmatprep.subr.bf16.mxu0 %v1630_v19  ;;  %1443 = vmatprep.mubr.msk.f32.mxu0 %vm1632_vm3, %v1631_v28 }
  0x13   :  { %1524 = vmatprep.subr.bf16.mxu1 %v1630_v19 }
  0x14   :  { %1433 = vmatmul.mubr.msk.f32.vlgmr.msra.gmra.mrb[2].mxu1 %vm503_vm4, %v1735_v35 }
  0x15   :  { %1523 = vmatpush3.bf16.msra.mxu0 %v1725_v34  ;;  %1526 = vmatpush3.bf16.msra.mxu1 %v1712_v31 }
  0x16   :  { %1527 = vmatprep.subr.bf16.mxu1 %v1630_v19  ;;  %1454 = vmatprep.mubr.msk.f32.mxu1 %vm1632_vm3, %v1631_v28 }
  0x17   :  { %1530 = vmatprep.subr.bf16.mxu0 %v1630_v19 }
  0x19   :  { %1529 = vmatpush3.bf16.msra.mxu1 %v1725_v34 }
  0x1a   :  { %1536 = vmatprep.subr.bf16.mxu1 %v1630_v19 }
  0xdf   :  { %v1413_v38 = vpop.f32.mrb[0].mxu0  ;;  %v1418_v39 = vpop.f32.mrb[0].mxu1 }
  0xe0   :  { %v162_v40 = vadd.f32 %v1413_v38, %v1321_v37  ;;  %v303_v41 = vadd.f32 %v1418_v39, %v1327_v36  ;;  %v156_v42 = vpop.f32.mrb[1].mxu0  ;;  %v297_v43 = vpop.f32.mrb[1].mxu1 }
  0xe1   :  { %v157_v44 = vadd.f32 %v1321_v37, %v156_v42  ;;  %v298_v45 = vadd.f32 %v1327_v36, %v297_v43 }
  0xe2   :  { %v184_v46 = vcombine.high %v162_v40, %v162_v40  ;;  %v191_v47 = vrot.slane %v162_v40, %v1693_v18  ;;  %v325_v48 = vcombine.high %v303_v41, %v303_v41  ;;  %v332_v49 = vrot.slane %v303_v41, %v1693_v18 }
  0xe3   :  { %v167_v50 = vcombine.high %v157_v44, %v157_v44  ;;  %v174_v51 = vrot.slane %v157_v44, %v1693_v18  ;;  %v308_v52 = vcombine.high %v298_v45, %v298_v45  ;;  %v315_v53 = vrot.slane %v298_v45, %v1693_v18  ;;  %v1423_v54 = vpop.f32.mrb[2].mxu0 }
  0xe4   :  { %v198_v56 = vrot.slane %v184_v46, %v1693_v18  ;;  %v199_v57 = vcombine.high %v191_v47, %v191_v47  ;;  %214 = vst.msk [vmem:[#allocation2 + $0x8] sm:$0x3] %vm21_vm1, %v191_v47  ;;  %v339_v58 = vrot.slane %v325_v48, %v1693_v18  ;;  %v340_v59 = vcombine.high %v332_v49, %v332_v49  ;;  %v437_v60 = vpop.f32.mrb[3].mxu0 }
  0xe5   :  { %354 = vst.msk [vmem:[#allocation3 + $0x8] sm:$0x3] %vm21_vm1, %v332_v49  ;;  %v181_v61 = vrot.slane %v167_v50, %v1693_v18  ;;  %v182_v62 = vcombine.high %v174_v51, %v174_v51  ;;  %210 = vst.msk [vmem:[#allocation2] sm:$0x3] %vm21_vm1, %v174_v51  ;;  %v322_v63 = vrot.slane %v308_v52, %v1693_v18 }
  0xe6   :  { %v323_v0 = vcombine.high %v315_v53, %v315_v53  ;;  %350 = vst.msk [vmem:[#allocation3] sm:$0x3] %vm21_vm1, %v315_v53  ;;  %v200_v1 = vcombine.high %v198_v56, %v198_v56  ;;  %215 = vst.msk [vmem:[#allocation2 + $0xa] sm:$0x3] %vm21_vm1, %v199_v57  ;;  %v341_v2 = vcombine.high %v339_v58, %v339_v58 }
  0xe7   :  { %216 = vst.msk [vmem:[#allocation2 + $0xc] sm:$0x3] %vm21_vm1, %v198_v56  ;;  %355 = vst.msk [vmem:[#allocation3 + $0xa] sm:$0x3] %vm21_vm1, %v340_v59  ;;  %v443_v3 = vadd.f32 %v1423_v54, %v1333_v55  ;;  %v438_v4 = vadd.f32 %v1333_v55, %v437_v60  ;;  %v183_v5 = vcombine.high %v181_v61, %v181_v61  ;;  %v573_v7 = vpop.f32.mrb[2].mxu1 }
  0xe8   :  { %356 = vst.msk [vmem:[#allocation3 + $0xc] sm:$0x3] %vm21_vm1, %v339_v58  ;;  %211 = vst.msk [vmem:[#allocation2 + $0x2] sm:$0x3] %vm21_vm1, %v182_v62  ;;  %v324_v6 = vcombine.high %v322_v63, %v322_v63  ;;  %583 = vrot.lane.b32.xlu0 %v573_v7, %s1633_s2  ;;  %v1434_v8 = vpop.f32.mrb[3].mxu1 }
  0xe9   :  { %212 = vst.msk [vmem:[#allocation2 + $0x4] sm:$0x3] %vm21_vm1, %v181_v61  ;;  %351 = vst.msk [vmem:[#allocation3 + $0x2] sm:$0x3] %vm21_vm1, %v323_v0  ;;  %v465_v9 = vcombine.high %v443_v3, %v443_v3  ;;  %v472_v10 = vrot.slane %v443_v3, %v1693_v18  ;;  %v448_v11 = vcombine.high %v438_v4, %v438_v4 }
  0xea   :  { %352 = vst.msk [vmem:[#allocation3 + $0x4] sm:$0x3] %vm21_vm1, %v322_v63  ;;  %217 = vst.msk [vmem:[#allocation2 + $0xe] sm:$0x3] %vm21_vm1, %v200_v1  ;;  %v455_v12 = vrot.slane %v438_v4, %v1693_v18 }
  0xeb   :  { %357 = vst.msk [vmem:[#allocation3 + $0xe] sm:$0x3] %vm21_vm1, %v341_v2  ;;  %213 = vst.msk [vmem:[#allocation2 + $0x6] sm:$0x3] %vm21_vm1, %v183_v5  ;;  %v479_v13 = vrot.slane %v465_v9, %v1693_v18  ;;  %v480_v14 = vcombine.high %v472_v10, %v472_v10  ;;  %v462_v15 = vrot.slane %v448_v11, %v1693_v18 }
  0xec   :  { %353 = vst.msk [vmem:[#allocation3 + $0x6] sm:$0x3] %vm21_vm1, %v324_v6  ;;  %494 = vst.msk [vmem:[#allocation4 + $0x8] sm:$0x3] %vm21_vm1, %v472_v10  ;;  %v463_v16 = vcombine.high %v455_v12, %v455_v12  ;;  %v577_v21 = vld [vmem:[#allocation2] sm:$0x3] }
  0xed   :  { %490 = vst.msk [vmem:[#allocation4] sm:$0x3] %vm21_vm1, %v455_v12  ;;  %v481_v17 = vcombine.high %v479_v13, %v479_v13  ;;  %495 = vst.msk [vmem:[#allocation4 + $0xa] sm:$0x3] %vm21_vm1, %v480_v14  ;;  %v464_v20 = vcombine.high %v462_v15, %v462_v15  ;;  %v578_v22 = vadd.f32 %v577_v21, %v573_v7  ;;  %v581_v23 = vld [vmem:[#allocation3] sm:$0x3] }
  0xee   :  { %496 = vst.msk [vmem:[#allocation4 + $0xc] sm:$0x3] %vm21_vm1, %v479_v13  ;;  %491 = vst.msk [vmem:[#allocation4 + $0x2] sm:$0x3] %vm21_vm1, %v463_v16 }
  0xef   :  { %492 = vst.msk [vmem:[#allocation4 + $0x4] sm:$0x3] %vm21_vm1, %v462_v15  ;;  %497 = vst.msk [vmem:[#allocation4 + $0xe] sm:$0x3] %vm21_vm1, %v481_v17  ;;  %1565 = vtanh.f32 %v578_v22  ;;  %v676_v44 = vld [vmem:[#allocation2 + $0x2] sm:$0x3] }
  0xf0   :  { %493 = vst.msk [vmem:[#allocation4 + $0x6] sm:$0x3] %vm21_vm1, %v464_v20  ;;  %v681_v46 = vld [vmem:[#allocation3 + $0x2] sm:$0x3]  ;;  %v778_v1 = vld [vmem:[#allocation2 + $0x4] sm:$0x3] }
  0xf1   :  { %v783_v3 = vld [vmem:[#allocation3 + $0x4] sm:$0x3] }
  0xf4   :  { %v595_v30 = vld [vmem:[#allocation4] sm:$0x3] }
  0xf5   :  { %v696_v54 = vld [vmem:[#allocation4 + $0x2] sm:$0x3] }
  0xf6   :  { %v798_v11 = vld [vmem:[#allocation4 + $0x4] sm:$0x3] }
  0xf9   :  { %v1566_v26 = vpop.eup %1565 }
  0xfa   :  { %v580_v27 = vadd.f32 1.0, %v1566_v26 }
  0xfc   :  { %v596_v29 = vmul.f32 %v580_v27, %v1735_v35 }
  0xfe   :  { %v597_v36 = vadd.f32 %v596_v29, %v595_v30 }
 0x15a   :  { %v584_v18 = vpop.permute.xlu0 %583 }
 0x15b   :  { %v586_v24 = vadd.f32 %v584_v18, %v581_v23  ;;  %v880_v23 = vld [vmem:[#allocation2 + $0x6] sm:$0x3] }
 0x15d   :  { %v1338_v25 = vmul.f32 -1.442695, %v586_v24 }
 0x15f   :  { %1567 = vpow2.f32 %v1338_v25  ;;  %v885_v25 = vld [vmem:[#allocation3 + $0x6] sm:$0x3] }
 0x169   :  { %v1568_v32 = vpop.eup %1567 }
 0x16a   :  { %v590_v33 = vadd.f32 1.0, %v1568_v32 }
 0x16c   :  { %1569 = vrcp.f32 %v590_v33 }
 0x16d   :  { %1571 = vtanh.f32 %v597_v36 }
 0x176   :  { %v1570_v37 = vpop.eup %1569 }
 0x177   :  { %v594_v38 = vsub.f32 1.0, %v1570_v37  ;;  %v1572_v39 = vpop.eup %1571  ;;  %v593_v40 = vmul.f32 %v1570_v37, %v1735_v35  ;;  %v900_v37 = vld [vmem:[#allocation4 + $0x6] sm:$0x3] }
 0x179   :  { %v599_v41 = vmul.f32 %v1572_v39, %v594_v38 }
 0x17b   :  { %v600_v42 = vadd.f32 %v599_v41, %v593_v40 }
 0x17d   :  { %601 = vst.msk [vmem:[%s1879_s4] sm:$0x3] %vm21_vm1, %v600_v42  ;;  %1444 = vmatmul.mubr.msk.f32.vlgmr.msra.gmra.mrb[4].mxu0 %vm503_vm4, %v600_v42 }
 0x17e   :  { %1532 = vmatpush3.bf16.msra.mxu0 %v1712_v31  ;;  %1465 = vmatprep.mubr.msk.f32.mxu0 %vm1632_vm3, %v1631_v28 }
 0x17f   :  { %1533 = vmatprep.subr.bf16.mxu0 %v1630_v19 }
 0x182   :  { %1535 = vmatpush3.bf16.msra.mxu0 %v1725_v34 }
 0x183   :  { %1542 = vmatprep.subr.bf16.mxu0 %v1630_v19 }
 0x250   :  { %v671_v35 = vpop.f32.mrb[4].mxu0 }
 0x251   :  { %683 = vrot.lane.b32.xlu0 %v671_v35, %s1633_s2  ;;  %v1445_v43 = vpop.f32.mrb[5].mxu0  ;;  %v677_v45 = vadd.f32 %v676_v44, %v671_v35 }
 0x253   :  { %1573 = vtanh.f32 %v677_v45 }
 0x25d   :  { %v1574_v50 = vpop.eup %1573 }
 0x25e   :  { %v679_v51 = vadd.f32 1.0, %v1574_v50 }
 0x260   :  { %v697_v52 = vmul.f32 %v679_v51, %v600_v42 }
 0x262   :  { %v698_v55 = vadd.f32 %v697_v52, %v696_v54 }
 0x2c3   :  { %v684_v47 = vpop.permute.xlu0 %683 }
 0x2c4   :  { %v686_v48 = vadd.f32 %v684_v47, %v681_v46  ;;  %v982_v47 = vld [vmem:[#allocation2 + $0x8] sm:$0x3] }
 0x2c6   :  { %v1340_v49 = vmul.f32 -1.442695, %v686_v48 }
 0x2c8   :  { %1575 = vpow2.f32 %v1340_v49  ;;  %v987_v49 = vld [vmem:[#allocation3 + $0x8] sm:$0x3] }
 0x2d2   :  { %v1576_v53 = vpop.eup %1575 }
 0x2d3   :  { %v690_v56 = vadd.f32 1.0, %v1576_v53 }
 0x2d5   :  { %1577 = vrcp.f32 %v690_v56 }
 0x2d6   :  { %1579 = vtanh.f32 %v698_v55 }
 0x2df   :  { %v1578_v57 = vpop.eup %1577 }
 0x2e0   :  { %v694_v58 = vsub.f32 1.0, %v1578_v57  ;;  %v1580_v59 = vpop.eup %1579  ;;  %v693_v60 = vmul.f32 %v1578_v57, %v600_v42  ;;  %v1002_v57 = vld [vmem:[#allocation4 + $0x8] sm:$0x3] }
 0x2e2   :  { %v700_v61 = vmul.f32 %v1580_v59, %v694_v58 }
 0x2e4   :  { %v701_v62 = vadd.f32 %v700_v61, %v693_v60 }
 0x2e6   :  { %1341 = vst.msk [vmem:[%s1879_s4 + $0x2] sm:$0x3] %vm21_vm1, %v701_v62  ;;  %1455 = vmatmul.mubr.msk.f32.vlgmr.msra.gmra.mrb[4].mxu1 %vm503_vm4, %v701_v62 }
 0x2e7   :  { %1538 = vmatpush3.bf16.msra.mxu1 %v1712_v31  ;;  %1476 = vmatprep.mubr.msk.f32.mxu1 %vm1632_vm3, %v1631_v28 }
 0x2e8   :  { %1539 = vmatprep.subr.bf16.mxu1 %v1630_v19 }
 0x2eb   :  { %1541 = vmatpush3.bf16.msra.mxu1 %v1725_v34 }
 0x2ec   :  { %1548 = vmatprep.subr.bf16.mxu1 %v1630_v19 }
 0x3b9   :  { %v773_v63 = vpop.f32.mrb[4].mxu1 }
 0x3ba   :  { %785 = vrot.lane.b32.xlu1 %v773_v63, %s1633_s2  ;;  %v1456_v0 = vpop.f32.mrb[5].mxu1  ;;  %v779_v2 = vadd.f32 %v778_v1, %v773_v63 }
 0x3bc   :  { %1581 = vtanh.f32 %v779_v2 }
 0x3c6   :  { %v1582_v7 = vpop.eup %1581 }
 0x3c7   :  { %v781_v8 = vadd.f32 1.0, %v1582_v7 }
 0x3c9   :  { %v799_v9 = vmul.f32 %v781_v8, %v701_v62 }
 0x3cb   :  { %v800_v12 = vadd.f32 %v799_v9, %v798_v11 }
 0x42c   :  { %v786_v4 = vpop.permute.xlu1 %785 }
 0x42d   :  { %v788_v5 = vadd.f32 %v786_v4, %v783_v3  ;;  %v1084_v4 = vld [vmem:[#allocation2 + $0xa] sm:$0x3] }
 0x42f   :  { %v1343_v6 = vmul.f32 -1.442695, %v788_v5 }
 0x431   :  { %1583 = vpow2.f32 %v1343_v6  ;;  %v1089_v6 = vld [vmem:[#allocation3 + $0xa] sm:$0x3] }
 0x43b   :  { %v1584_v10 = vpop.eup %1583 }
 0x43c   :  { %v792_v13 = vadd.f32 1.0, %v1584_v10 }
 0x43e   :  { %1585 = vrcp.f32 %v792_v13 }
 0x43f   :  { %1587 = vtanh.f32 %v800_v12  ;;  %v1104_v12 = vld [vmem:[#allocation4 + $0xa] sm:$0x3] }
 0x448   :  { %v1586_v14 = vpop.eup %1585 }
 0x449   :  { %v796_v15 = vsub.f32 1.0, %v1586_v14  ;;  %v1588_v16 = vpop.eup %1587  ;;  %v795_v17 = vmul.f32 %v1586_v14, %v701_v62 }
 0x44b   :  { %v802_v20 = vmul.f32 %v1588_v16, %v796_v15 }
 0x44d   :  { %v803_v21 = vadd.f32 %v802_v20, %v795_v17 }
 0x44f   :  { %1344 = vst.msk [vmem:[%s1879_s4 + $0x4] sm:$0x3] %vm21_vm1, %v803_v21  ;;  %1466 = vmatmul.mubr.msk.f32.vlgmr.msra.gmra.mrb[6].mxu0 %vm503_vm4, %v803_v21 }
 0x450   :  { %1544 = vmatpush3.bf16.msra.mxu0 %v1712_v31  ;;  %1487 = vmatprep.mubr.msk.f32.mxu0 %vm1632_vm3, %v1631_v28 }
 0x451   :  { %1545 = vmatprep.subr.bf16.mxu0 %v1630_v19 }
 0x454   :  { %1547 = vmatpush3.bf16.msra.mxu0 %v1725_v34 }
 0x455   :  { %1554 = vmatprep.subr.bf16.mxu0 %v1630_v19 }
 0x522   :  { %v875_v22 = vpop.f32.mrb[6].mxu0 }
 0x523   :  { %887 = vrot.lane.b32.xlu1 %v875_v22, %s1633_s2  ;;  %v1467_v18 = vpop.f32.mrb[7].mxu0  ;;  %v881_v24 = vadd.f32 %v880_v23, %v875_v22 }
 0x524   :  { %v1186_v18 = vld [vmem:[#allocation2 + $0xc] sm:$0x3] }
 0x525   :  { %1589 = vtanh.f32 %v881_v24  ;;  %v1191_v24 = vld [vmem:[#allocation3 + $0xc] sm:$0x3] }
 0x52f   :  { %v1590_v30 = vpop.eup %1589 }
 0x530   :  { %v883_v32 = vadd.f32 1.0, %v1590_v30 }
 0x532   :  { %v901_v33 = vmul.f32 %v883_v32, %v803_v21 }
 0x534   :  { %v902_v38 = vadd.f32 %v901_v33, %v900_v37 }
 0x595   :  { %v888_v26 = vpop.permute.xlu1 %887 }
 0x596   :  { %v890_v27 = vadd.f32 %v888_v26, %v885_v25 }
 0x598   :  { %v1346_v29 = vmul.f32 -1.442695, %v890_v27 }
 0x59a   :  { %1591 = vpow2.f32 %v1346_v29 }
 0x5a4   :  { %v1592_v36 = vpop.eup %1591 }
 0x5a5   :  { %v894_v39 = vadd.f32 1.0, %v1592_v36  ;;  %v1206_v36 = vld [vmem:[#allocation4 + $0xc] sm:$0x3] }
 0x5a7   :  { %1593 = vrcp.f32 %v894_v39 }
 0x5a8   :  { %1595 = vtanh.f32 %v902_v38 }
 0x5b1   :  { %v1594_v40 = vpop.eup %1593 }
 0x5b2   :  { %v898_v41 = vsub.f32 1.0, %v1594_v40  ;;  %v1596_v42 = vpop.eup %1595  ;;  %v897_v35 = vmul.f32 %v1594_v40, %v803_v21 }
 0x5b4   :  { %v904_v43 = vmul.f32 %v1596_v42, %v898_v41 }
 0x5b6   :  { %v905_v44 = vadd.f32 %v904_v43, %v897_v35 }
 0x5b8   :  { %1347 = vst.msk [vmem:[%s1879_s4 + $0x6] sm:$0x3] %vm21_vm1, %v905_v44  ;;  %1477 = vmatmul.mubr.msk.f32.vlgmr.msra.gmra.mrb[6].mxu1 %vm503_vm4, %v905_v44 }
 0x5b9   :  { %1550 = vmatpush3.bf16.msra.mxu1 %v1712_v31  ;;  %1498 = vmatprep.mubr.msk.f32.mxu1 %vm1632_vm3, %v1631_v28 }
 0x5ba   :  { %1551 = vmatprep.subr.bf16.mxu1 %v1630_v19 }
 0x5bd   :  { %1553 = vmatpush3.bf16.msra.mxu1 %v1725_v34 }
 0x68b   :  { %v977_v45 = vpop.f32.mrb[6].mxu1 }
 0x68c   :  { %989 = vrot.lane.b32.xlu0 %v977_v45, %s1633_s2  ;;  %v1478_v46 = vpop.f32.mrb[7].mxu1  ;;  %v983_v48 = vadd.f32 %v982_v47, %v977_v45 }
 0x68d   :  { %v1288_v46 = vld [vmem:[#allocation2 + $0xe] sm:$0x3] }
 0x68e   :  { %1597 = vtanh.f32 %v983_v48  ;;  %v1293_v48 = vld [vmem:[#allocation3 + $0xe] sm:$0x3] }
 0x698   :  { %v1598_v53 = vpop.eup %1597 }
 0x699   :  { %v985_v54 = vadd.f32 1.0, %v1598_v53 }
 0x69b   :  { %v1003_v55 = vmul.f32 %v985_v54, %v905_v44 }
 0x69d   :  { %v1004_v58 = vadd.f32 %v1003_v55, %v1002_v57 }
 0x6fe   :  { %v990_v50 = vpop.permute.xlu0 %989 }
 0x6ff   :  { %v992_v51 = vadd.f32 %v990_v50, %v987_v49 }
 0x701   :  { %v1349_v52 = vmul.f32 -1.442695, %v992_v51 }
 0x703   :  { %1599 = vpow2.f32 %v1349_v52 }
 0x70d   :  { %v1600_v56 = vpop.eup %1599 }
 0x70e   :  { %v996_v59 = vadd.f32 1.0, %v1600_v56  ;;  %v1308_v56 = vld [vmem:[#allocation4 + $0xe] sm:$0x3] }
 0x710   :  { %1601 = vrcp.f32 %v996_v59 }
 0x711   :  { %1603 = vtanh.f32 %v1004_v58 }
 0x71a   :  { %v1602_v60 = vpop.eup %1601 }
 0x71b   :  { %v1000_v61 = vsub.f32 1.0, %v1602_v60  ;;  %v1604_v62 = vpop.eup %1603  ;;  %v999_v63 = vmul.f32 %v1602_v60, %v905_v44 }
 0x71d   :  { %v1006_v0 = vmul.f32 %v1604_v62, %v1000_v61 }
 0x71f   :  { %v1007_v1 = vadd.f32 %v1006_v0, %v999_v63 }
 0x721   :  { %1350 = vst.msk [vmem:[%s1879_s4 + $0x8] sm:$0x3] %vm21_vm1, %v1007_v1  ;;  %1488 = vmatmul.mubr.msk.f32.vlgmr.msra.gmra.mrb[8].mxu0 %vm503_vm4, %v1007_v1 }
 0x722   :  { %1556 = vmatpush3.bf16.msra.mxu0 %v1712_v31  ;;  %1509 = vmatprep.mubr.msk.f32.mxu0 %vm1632_vm3, %v1631_v28 }
 0x723   :  { %1557 = vmatprep.subr.bf16.mxu0 %v1630_v19 }
 0x726   :  { %1559 = vmatpush3.bf16.msra.mxu0 %v1725_v34 }
 0x7f4   :  { %v1079_v2 = vpop.f32.mrb[8].mxu0 }
 0x7f5   :  { %1091 = vrot.lane.b32.xlu1 %v1079_v2, %s1633_s2  ;;  %v1489_v3 = vpop.f32.mrb[9].mxu0  ;;  %v1085_v5 = vadd.f32 %v1084_v4, %v1079_v2 }
 0x7f7   :  { %1605 = vtanh.f32 %v1085_v5 }
 0x801   :  { %v1606_v10 = vpop.eup %1605 }
 0x802   :  { %v1087_v31 = vadd.f32 1.0, %v1606_v10 }
 0x804   :  { %v1105_v11 = vmul.f32 %v1087_v31, %v1007_v1 }
 0x806   :  { %v1106_v19 = vadd.f32 %v1105_v11, %v1104_v12 }
 0x867   :  { %v1092_v7 = vpop.permute.xlu1 %1091 }
 0x868   :  { %v1094_v8 = vadd.f32 %v1092_v7, %v1089_v6 }
 0x86a   :  { %v1352_v9 = vmul.f32 -1.442695, %v1094_v8 }
 0x86c   :  { %1607 = vpow2.f32 %v1352_v9 }
 0x876   :  { %v1608_v28 = vpop.eup %1607 }
 0x877   :  { %v1098_v13 = vadd.f32 1.0, %v1608_v28 }
 0x879   :  { %1609 = vrcp.f32 %v1098_v13 }
 0x87a   :  { %1611 = vtanh.f32 %v1106_v19 }
 0x883   :  { %v1610_v34 = vpop.eup %1609 }
 0x884   :  { %v1102_v14 = vsub.f32 1.0, %v1610_v34  ;;  %v1612_v15 = vpop.eup %1611  ;;  %v1101_v16 = vmul.f32 %v1610_v34, %v1007_v1 }
 0x886   :  { %v1108_v17 = vmul.f32 %v1612_v15, %v1102_v14 }
 0x888   :  { %v1109_v20 = vadd.f32 %v1108_v17, %v1101_v16 }
 0x88a   :  { %1353 = vst.msk [vmem:[%s1879_s4 + $0xa] sm:$0x3] %vm21_vm1, %v1109_v20  ;;  %1499 = vmatmul.mubr.msk.f32.vlgmr.msra.gmra.mrb[8].mxu1 %vm503_vm4, %v1109_v20 }
 0x95d   :  { %v1181_v21 = vpop.f32.mrb[8].mxu1 }
 0x95e   :  { %1193 = vrot.lane.b32.xlu0 %v1181_v21, %s1633_s2  ;;  %v1500_v22 = vpop.f32.mrb[9].mxu1  ;;  %v1187_v23 = vadd.f32 %v1186_v18, %v1181_v21 }
 0x960   :  { %1613 = vtanh.f32 %v1187_v23 }
 0x96a   :  { %v1614_v29 = vpop.eup %1613 }
 0x96b   :  { %v1189_v30 = vadd.f32 1.0, %v1614_v29 }
 0x96d   :  { %v1207_v32 = vmul.f32 %v1189_v30, %v1109_v20 }
 0x96f   :  { %v1208_v37 = vadd.f32 %v1207_v32, %v1206_v36 }
 0x9d0   :  { %v1194_v25 = vpop.permute.xlu0 %1193 }
 0x9d1   :  { %v1196_v26 = vadd.f32 %v1194_v25, %v1191_v24 }
 0x9d3   :  { %v1355_v27 = vmul.f32 -1.442695, %v1196_v26 }
 0x9d5   :  { %1615 = vpow2.f32 %v1355_v27 }
 0x9df   :  { %v1616_v33 = vpop.eup %1615 }
 0x9e0   :  { %v1200_v38 = vadd.f32 1.0, %v1616_v33 }
 0x9e2   :  { %1617 = vrcp.f32 %v1200_v38 }
 0x9e3   :  { %1619 = vtanh.f32 %v1208_v37 }
 0x9ec   :  { %v1618_v39 = vpop.eup %1617 }
 0x9ed   :  { %v1204_v40 = vsub.f32 1.0, %v1618_v39  ;;  %v1620_v41 = vpop.eup %1619  ;;  %v1203_v42 = vmul.f32 %v1618_v39, %v1109_v20 }
 0x9ef   :  { %v1210_v35 = vmul.f32 %v1620_v41, %v1204_v40 }
 0x9f1   :  { %v1211_v43 = vadd.f32 %v1210_v35, %v1203_v42 }
 0x9f3   :  { %1356 = vst.msk [vmem:[%s1879_s4 + $0xc] sm:$0x3] %vm21_vm1, %v1211_v43  ;;  %1510 = vmatmul.mubr.msk.f32.vlgmr.msra.gmra.mrb[10].mxu0 %vm503_vm4, %v1211_v43 }
 0xac6   :  { %v1283_v44 = vpop.f32.mrb[10].mxu0 }
 0xac7   :  { %1295 = vrot.lane.b32.xlu1 %v1283_v44, %s1633_s2  ;;  %v1511_v45 = vpop.f32.mrb[11].mxu0  ;;  %v1289_v47 = vadd.f32 %v1288_v46, %v1283_v44 }
 0xac9   :  { %1621 = vtanh.f32 %v1289_v47 }
 0xad3   :  { %v1622_v52 = vpop.eup %1621 }
 0xad4   :  { %v1291_v53 = vadd.f32 1.0, %v1622_v52 }
 0xad6   :  { %v1309_v54 = vmul.f32 %v1291_v53, %v1211_v43 }
 0xad8   :  { %v1310_v57 = vadd.f32 %v1309_v54, %v1308_v56 }
 0xb39   :  { %v1296_v49 = vpop.permute.xlu1 %1295 }
 0xb3a   :  { %v1298_v50 = vadd.f32 %v1296_v49, %v1293_v48 }
 0xb3c   :  { %v1358_v51 = vmul.f32 -1.442695, %v1298_v50 }
 0xb3e   :  { %1623 = vpow2.f32 %v1358_v51 }
 0xb48   :  { %v1624_v55 = vpop.eup %1623 }
 0xb49   :  { %v1302_v58 = vadd.f32 1.0, %v1624_v55 }
 0xb4b   :  { %1625 = vrcp.f32 %v1302_v58 }
 0xb4c   :  { %1627 = vtanh.f32 %v1310_v57 }
 0xb55   :  { %v1626_v59 = vpop.eup %1625 }
 0xb56   :  { %v1306_v60 = vsub.f32 1.0, %v1626_v59  ;;  %v1628_v61 = vpop.eup %1627  ;;  %v1305_v62 = vmul.f32 %v1626_v59, %v1211_v43 }
 0xb58   :  { %v1312_v63 = vmul.f32 %v1628_v61, %v1306_v60 }
 0xb5a   :  { %v1313_v0 = vadd.f32 %v1312_v63, %v1305_v62 }
 0xb5c   :  { %1359 = vst.msk [vmem:[%s1879_s4 + $0xe] sm:$0x3] %vm21_vm1, %v1313_v0  ;;  %1316 = vst.msk [vmem:[#allocation5] sm:$0x3] %vm21_vm1, %v1313_v0 }

// kernel: nbrc_model_forward.4
= control target key start
LH: loop header
LB: loop body
LE: loop exit
PB: predicated region body
PF: predicated region fallthrough
CT: control target
= control target key end

     0   :  { %v55_v0 = vlaneseq  ;;  %v1681_v4 = vmov 1983009808   ;;  %vm21_vm0 = vcmask 254976   ;;  %v1682_v11 = vmov 0.0   ;;  %s1685_s14 = smov 96   ;;  %s1948_s1 = inlined_call_operand.vmem [shape: f32[3,32,32], index: 1, kind: input, shape index: {}]   ;;  %s1949_s0 = inlined_call_operand.vmem [shape: f32[8,2,32], index: 0, kind: input, shape index: {}]   ;;  %s1950_s3 = inlined_call_operand.vmem [shape: f32[32,64], index: 3, kind: input, shape index: {}]   ;;  %s1951_s2 = inlined_call_operand.vmem [shape: f32[3,1,32], index: 2, kind: input, shape index: {}]   ;;  %s1952_s4 = inlined_call_operand.vmem [shape: f32[8,2,32], index: 4, kind: output, shape index: {}]  }
   0x1   :  { %v31_v1 = vld [vmem:[%s1948_s1] sm:$0xff]  ;;  %v32_v2 = vld [vmem:[%s1948_s1 + $0x8] sm:$0xff]  ;;  %v53_v5 = vunpack.c.l.s4 %v1681_v4  ;;  %v33_v8 = vld [vmem:[%s1948_s1 + $0x10] sm:$0xff]  ;;  %22 = vst.msk [vmem:[#allocation5] sm:$0x3] %vm21_vm0, %v1682_v11  ;;  %vm84_vm1 = vcmask 261120  }
   0x2   :  { %v1322_v3 = vld [vmem:[%s1948_s1 + $0x20] sm:$0xff]  ;;  %v1540_v6 = vpack.c.bf16 %v32_v2, %v31_v1  ;;  %v1323_v7 = vld [vmem:[%s1948_s1 + $0x28] sm:$0xff]  ;;  %v34_v9 = vld [vmem:[%s1948_s1 + $0x18] sm:$0xff]  ;;  %v56_v10 = vshrl.u32 %v55_v0, 7  ;;  %v1683_v47 = vmov 0.0|0.0   ;;  %vm1684_vm2 = vmmov 0  }
   0x3   :  { %v1548_v12 = vpack.c.bf16 %v1323_v7, %v1322_v3  ;;  %v1544_v13 = vpack.c.bf16 %v34_v9, %v33_v8  ;;  %v1324_v14 = vld [vmem:[%s1948_s1 + $0x30] sm:$0xff]  ;;  %v1325_v15 = vld [vmem:[%s1948_s1 + $0x38] sm:$0xff]  ;;  %v23_v16 = vld [vmem:[%s1949_s0] sm:$0x3]  ;;  %v54_v17 = vunpack.c.0.s8 %v53_v5 }
   0x4   :  { %1541 = vmatprep.subr.bf16.mxu0 %v1540_v6  ;;  %v1552_v18 = vpack.c.bf16 %v1325_v15, %v1324_v14  ;;  %v24_v19 = vld [vmem:[%s1949_s0 + $0x2] sm:$0x3]  ;;  %v25_v20 = vld [vmem:[%s1949_s0 + $0x4] sm:$0x3]  ;;  %v26_v21 = vld [vmem:[%s1949_s0 + $0x6] sm:$0x3] }
   0x5   :  { %1549 = vmatprep.subr.bf16.mxu1 %v1548_v12  ;;  %1543 = vmatpush3.bf16.msra.mxu0 %v1540_v6  ;;  %v50_v22 = vcombine.low %v23_v16, %v24_v19  ;;  %v51_v23 = vcombine.low %v25_v20, %v26_v21  ;;  %v1749_v24 = vsub.s32 %v54_v17, %v56_v10  ;;  %v27_v25 = vld [vmem:[%s1949_s0 + $0x8] sm:$0x3]  ;;  %v28_v26 = vld [vmem:[%s1949_s0 + $0xa] sm:$0x3]  ;;  %v29_v27 = vld [vmem:[%s1949_s0 + $0xc] sm:$0x3] }
   0x6   :  { %1551 = vmatpush3.bf16.msra.mxu1 %v1548_v12  ;;  %1545 = vmatprep.subr.bf16.mxu0 %v1544_v13  ;;  %v30_v28 = vld [vmem:[%s1949_s0 + $0xe] sm:$0x3]  ;;  %v67_v29 = vcombine.low %v27_v25, %v28_v26  ;;  %v497_v33 = vld [vmem:[%s1950_s3] sm:$0xff]  ;;  %v1332_v41 = vld [vmem:[%s1948_s1 + $0x50] sm:$0xff] }
   0x7   :  { %1553 = vmatprep.subr.bf16.mxu1 %v1552_v18  ;;  %v58_v30 = vrot.slane %v50_v22, %v1749_v24  ;;  %v65_v31 = vrot.slane %v51_v23, %v1749_v24  ;;  %v68_v32 = vcombine.low %v29_v27, %v30_v28  ;;  %v498_v34 = vld [vmem:[%s1950_s3 + $0x8] sm:$0xff]  ;;  %v1330_v35 = vld [vmem:[%s1948_s1 + $0x40] sm:$0xff]  ;;  %v1333_v42 = vld [vmem:[%s1948_s1 + $0x58] sm:$0xff] }
   0x8   :  { %v75_v36 = vrot.slane %v67_v29, %v1749_v24  ;;  %v1331_v37 = vld [vmem:[%s1948_s1 + $0x48] sm:$0xff]  ;;  %v1785_v43 = vpack.c.bf16 %v498_v34, %v497_v33  ;;  %v499_v45 = vld [vmem:[%s1950_s3 + $0x10] sm:$0xff]  ;;  %v500_v46 = vld [vmem:[%s1950_s3 + $0x18] sm:$0xff]  ;;  %v1560_v48 = vpack.c.bf16 %v1333_v42, %v1332_v41 }
   0x9   :  { %1547 = vmatpush3.bf16.msra.mxu0 %v1544_v13  ;;  %v66_v38 = vcombine.low %v58_v30, %v65_v31  ;;  %v82_v39 = vrot.slane %v68_v32, %v1749_v24  ;;  %v1556_v40 = vpack.c.bf16 %v1331_v37, %v1330_v35  ;;  %v1799_v49 = vpack.c.bf16 %v500_v46, %v499_v45  ;;  %v1806_v50 = vld [vmem:[#allocation5] sm:$0x3]  ;;  %v1327_v51 = vld [vmem:[%s1951_s2 + $0x1] ss:$0 sm:$0xff]  ;;  %v1319_v52 = vld [vmem:[%s1951_s2] ss:$0 sm:$0xff] }
   0xa   :  { %1555 = vmatpush3.bf16.msra.mxu1 %v1552_v18  ;;  %v1335_v19 = vld [vmem:[%s1951_s2 + $0x2] ss:$0 sm:$0xff] }
   0xb   :  { %1427 = vmatprep.mubr.msk.f32.mxu0 %vm84_vm1, %v66_v38  ;;  %1438 = vmatprep.mubr.msk.f32.mxu1 %vm84_vm1, %v66_v38  ;;  %v83_v44 = vcombine.low %v75_v36, %v82_v39 }
   0xc   :  { %1564 = vmatprep.subr.bf16.mxu1 %v1683_v47  ;;  %1557 = vmatprep.subr.bf16.mxu0 %v1556_v40 }
   0xd   :  { %1428 = vmatmul.mubr.msk.f32.vlgmr.msra.gmra.mrb[0].mxu0 %vm84_vm1, %v83_v44  ;;  %1439 = vmatmul.mubr.msk.f32.vlgmr.msra.gmra.mrb[0].mxu1 %vm84_vm1, %v83_v44 }
   0xe   :  { %1566 = vmatpush3.bf16.msra.mxu1 %v1785_v43  ;;  %1460 = vmatprep.mubr.msk.f32.mxu1 %vm1684_vm2, %v1682_v11 }
   0xf   :  { %1567 = vmatprep.subr.bf16.mxu1 %v1683_v47  ;;  %1559 = vmatpush3.bf16.msra.mxu0 %v1556_v40 }
  0x10   :  { %1561 = vmatprep.subr.bf16.mxu0 %v1560_v48  ;;  %1449 = vmatprep.mubr.msk.f32.mxu0 %vm84_vm1, %v66_v38 }
  0x12   :  { %1569 = vmatpush3.bf16.msra.mxu1 %v1799_v49 }
  0x13   :  { %1563 = vmatpush3.bf16.msra.mxu0 %v1560_v48  ;;  %1576 = vmatprep.subr.bf16.mxu1 %v1683_v47 }
  0x14   :  { %1570 = vmatprep.subr.bf16.mxu0 %v1683_v47 }
  0x15   :  { %1461 = vmatmul.mubr.msk.f32.vlgmr.msra.gmra.mrb[2].mxu1 %vm84_vm1, %v1806_v50 }
  0x16   :  { %1450 = vmatmul.mubr.msk.f32.vlgmr.msra.gmra.mrb[2].mxu0 %vm84_vm1, %v83_v44  ;;  %1578 = vmatpush3.bf16.msra.mxu1 %v1785_v43 }
  0x17   :  { %1572 = vmatpush3.bf16.msra.mxu0 %v1785_v43  ;;  %1471 = vmatprep.mubr.msk.f32.mxu0 %vm1684_vm2, %v1682_v11 }
  0x18   :  { %1573 = vmatprep.subr.bf16.mxu0 %v1683_v47  ;;  %1579 = vmatprep.subr.bf16.mxu1 %v1683_v47 }
  0x19   :  { %1482 = vmatprep.mubr.msk.f32.mxu1 %vm1684_vm2, %v1682_v11 }
  0x1a   :  { %1581 = vmatpush3.bf16.msra.mxu1 %v1799_v49 }
  0x1b   :  { %1575 = vmatpush3.bf16.msra.mxu0 %v1799_v49  ;;  %1588 = vmatprep.subr.bf16.mxu1 %v1683_v47 }
  0x1c   :  { %1582 = vmatprep.subr.bf16.mxu0 %v1683_v47 }
  0xe0   :  { %v1429_v53 = vpop.f32.mrb[0].mxu0  ;;  %v1440_v54 = vpop.f32.mrb[0].mxu1 }
  0xe1   :  { %v161_v55 = vadd.f32 %v1429_v53, %v1319_v52  ;;  %v302_v56 = vadd.f32 %v1440_v54, %v1327_v51  ;;  %v155_v57 = vpop.f32.mrb[1].mxu0  ;;  %v296_v58 = vpop.f32.mrb[1].mxu1 }
  0xe2   :  { %v156_v59 = vadd.f32 %v1319_v52, %v155_v57  ;;  %v297_v60 = vadd.f32 %v1327_v51, %v296_v58 }
  0xe3   :  { %v183_v61 = vcombine.high %v161_v55, %v161_v55  ;;  %v190_v62 = vrot.slane %v161_v55, %v1749_v24  ;;  %v324_v63 = vcombine.high %v302_v56, %v302_v56  ;;  %v331_v0 = vrot.slane %v302_v56, %v1749_v24 }
  0xe4   :  { %v166_v1 = vcombine.high %v156_v59, %v156_v59  ;;  %v173_v2 = vrot.slane %v156_v59, %v1749_v24  ;;  %v307_v3 = vcombine.high %v297_v60, %v297_v60  ;;  %v314_v4 = vrot.slane %v297_v60, %v1749_v24 }
  0xe5   :  { %v197_v5 = vrot.slane %v183_v61, %v1749_v24  ;;  %v198_v6 = vcombine.high %v190_v62, %v190_v62  ;;  %213 = vst.msk [vmem:[#allocation2 + $0x8] sm:$0x3] %vm21_vm0, %v190_v62  ;;  %v338_v7 = vrot.slane %v324_v63, %v1749_v24  ;;  %v339_v8 = vcombine.high %v331_v0, %v331_v0 }
  0xe6   :  { %353 = vst.msk [vmem:[#allocation3 + $0x8] sm:$0x3] %vm21_vm0, %v331_v0  ;;  %v180_v9 = vrot.slane %v166_v1, %v1749_v24  ;;  %v181_v10 = vcombine.high %v173_v2, %v173_v2  ;;  %209 = vst.msk [vmem:[#allocation2] sm:$0x3] %vm21_vm0, %v173_v2  ;;  %v321_v12 = vrot.slane %v307_v3, %v1749_v24 }
  0xe7   :  { %v322_v13 = vcombine.high %v314_v4, %v314_v4  ;;  %349 = vst.msk [vmem:[#allocation3] sm:$0x3] %vm21_vm0, %v314_v4  ;;  %v199_v14 = vcombine.high %v197_v5, %v197_v5  ;;  %214 = vst.msk [vmem:[#allocation2 + $0xa] sm:$0x3] %vm21_vm0, %v198_v6  ;;  %v340_v15 = vcombine.high %v338_v7, %v338_v7 }
  0xe8   :  { %215 = vst.msk [vmem:[#allocation2 + $0xc] sm:$0x3] %vm21_vm0, %v197_v5  ;;  %354 = vst.msk [vmem:[#allocation3 + $0xa] sm:$0x3] %vm21_vm0, %v339_v8  ;;  %v182_v16 = vcombine.high %v180_v9, %v180_v9  ;;  %v323_v17 = vcombine.high %v321_v12, %v321_v12  ;;  %v571_v18 = vpop.f32.mrb[2].mxu1 }
  0xe9   :  { %355 = vst.msk [vmem:[#allocation3 + $0xc] sm:$0x3] %vm21_vm0, %v338_v7  ;;  %210 = vst.msk [vmem:[#allocation2 + $0x2] sm:$0x3] %vm21_vm0, %v181_v10  ;;  %581 = vrot.lane.b32.xlu0 %v571_v18, %s1685_s14  ;;  %v1462_v20 = vpop.f32.mrb[3].mxu1  ;;  %v1451_v21 = vpop.f32.mrb[2].mxu0 }
  0xea   :  { %211 = vst.msk [vmem:[#allocation2 + $0x4] sm:$0x3] %vm21_vm0, %v180_v9  ;;  %350 = vst.msk [vmem:[#allocation3 + $0x2] sm:$0x3] %vm21_vm0, %v322_v13  ;;  %v442_v22 = vadd.f32 %v1451_v21, %v1335_v19  ;;  %v436_v23 = vpop.f32.mrb[3].mxu0 }
  0xeb   :  { %351 = vst.msk [vmem:[#allocation3 + $0x4] sm:$0x3] %vm21_vm0, %v321_v12  ;;  %216 = vst.msk [vmem:[#allocation2 + $0xe] sm:$0x3] %vm21_vm0, %v199_v14  ;;  %v437_v25 = vadd.f32 %v1335_v19, %v436_v23 }
  0xec   :  { %356 = vst.msk [vmem:[#allocation3 + $0xe] sm:$0x3] %vm21_vm0, %v340_v15  ;;  %212 = vst.msk [vmem:[#allocation2 + $0x6] sm:$0x3] %vm21_vm0, %v182_v16  ;;  %v464_v26 = vcombine.high %v442_v22, %v442_v22  ;;  %v471_v27 = vrot.slane %v442_v22, %v1749_v24 }
  0xed   :  { %352 = vst.msk [vmem:[#allocation3 + $0x6] sm:$0x3] %vm21_vm0, %v323_v17  ;;  %v447_v28 = vcombine.high %v437_v25, %v437_v25  ;;  %v454_v29 = vrot.slane %v437_v25, %v1749_v24  ;;  %v575_v36 = vld [vmem:[#allocation2] sm:$0x3] }
  0xee   :  { %v478_v30 = vrot.slane %v464_v26, %v1749_v24  ;;  %v479_v31 = vcombine.high %v471_v27, %v471_v27  ;;  %493 = vst.msk [vmem:[#allocation4 + $0x8] sm:$0x3] %vm21_vm0, %v471_v27  ;;  %v576_v37 = vadd.f32 %v575_v36, %v571_v18  ;;  %v579_v38 = vld [vmem:[#allocation3] sm:$0x3] }
  0xef   :  { %v461_v32 = vrot.slane %v447_v28, %v1749_v24  ;;  %v462_v33 = vcombine.high %v454_v29, %v454_v29  ;;  %489 = vst.msk [vmem:[#allocation4] sm:$0x3] %vm21_vm0, %v454_v29 }
  0xf0   :  { %v480_v34 = vcombine.high %v478_v30, %v478_v30  ;;  %494 = vst.msk [vmem:[#allocation4 + $0xa] sm:$0x3] %vm21_vm0, %v479_v31  ;;  %495 = vst.msk [vmem:[#allocation4 + $0xc] sm:$0x3] %vm21_vm0, %v478_v30  ;;  %1617 = vtanh.f32 %v576_v37  ;;  %v674_v59 = vld [vmem:[#allocation2 + $0x2] sm:$0x3] }
  0xf1   :  { %v463_v35 = vcombine.high %v461_v32, %v461_v32  ;;  %490 = vst.msk [vmem:[#allocation4 + $0x2] sm:$0x3] %vm21_vm0, %v462_v33  ;;  %491 = vst.msk [vmem:[#allocation4 + $0x4] sm:$0x3] %vm21_vm0, %v461_v32  ;;  %v679_v61 = vld [vmem:[#allocation3 + $0x2] sm:$0x3] }
  0xf2   :  { %496 = vst.msk [vmem:[#allocation4 + $0xe] sm:$0x3] %vm21_vm0, %v480_v34  ;;  %v776_v17 = vld [vmem:[#allocation2 + $0x4] sm:$0x3]  ;;  %v781_v19 = vld [vmem:[#allocation3 + $0x4] sm:$0x3] }
  0xf3   :  { %492 = vst.msk [vmem:[#allocation4 + $0x6] sm:$0x3] %vm21_vm0, %v463_v35 }
  0xf6   :  { %v593_v45 = vld [vmem:[#allocation4] sm:$0x3] }
  0xf8   :  { %v694_v5 = vld [vmem:[#allocation4 + $0x2] sm:$0x3]  ;;  %v796_v28 = vld [vmem:[#allocation4 + $0x4] sm:$0x3] }
  0xfa   :  { %v1618_v41 = vpop.eup %1617 }
  0xfb   :  { %v578_v42 = vadd.f32 1.0, %v1618_v41 }
  0xfd   :  { %v594_v44 = vmul.f32 %v578_v42, %v1806_v50 }
  0xff   :  { %v595_v51 = vadd.f32 %v594_v44, %v593_v45 }
 0x15b   :  { %v582_v24 = vpop.permute.xlu0 %581 }
 0x15c   :  { %v584_v39 = vadd.f32 %v582_v24, %v579_v38  ;;  %v878_v38 = vld [vmem:[#allocation2 + $0x6] sm:$0x3] }
 0x15e   :  { %v1339_v40 = vmul.f32 -1.442695, %v584_v39 }
 0x160   :  { %1619 = vpow2.f32 %v1339_v40  ;;  %v883_v40 = vld [vmem:[#allocation3 + $0x6] sm:$0x3] }
 0x16a   :  { %v1620_v46 = vpop.eup %1619 }
 0x16b   :  { %v588_v48 = vadd.f32 1.0, %v1620_v46 }
 0x16d   :  { %1621 = vrcp.f32 %v588_v48 }
 0x16e   :  { %1623 = vtanh.f32 %v595_v51 }
 0x177   :  { %v1622_v52 = vpop.eup %1621 }
 0x178   :  { %v592_v53 = vsub.f32 1.0, %v1622_v52  ;;  %v1624_v54 = vpop.eup %1623  ;;  %v591_v55 = vmul.f32 %v1622_v52, %v1806_v50  ;;  %v898_v52 = vld [vmem:[#allocation4 + $0x6] sm:$0x3] }
 0x17a   :  { %v597_v56 = vmul.f32 %v1624_v54, %v592_v53 }
 0x17c   :  { %v598_v57 = vadd.f32 %v597_v56, %v591_v55 }
 0x17e   :  { %599 = vst.msk [vmem:[%s1952_s4] sm:$0x3] %vm21_vm0, %v598_v57  ;;  %1472 = vmatmul.mubr.msk.f32.vlgmr.msra.gmra.mrb[4].mxu0 %vm84_vm1, %v598_v57 }
 0x17f   :  { %1584 = vmatpush3.bf16.msra.mxu0 %v1785_v43  ;;  %1493 = vmatprep.mubr.msk.f32.mxu0 %vm1684_vm2, %v1682_v11 }
 0x180   :  { %1585 = vmatprep.subr.bf16.mxu0 %v1683_v47 }
 0x183   :  { %1587 = vmatpush3.bf16.msra.mxu0 %v1799_v49 }
 0x184   :  { %1594 = vmatprep.subr.bf16.mxu0 %v1683_v47 }
 0x251   :  { %v669_v50 = vpop.f32.mrb[4].mxu0 }
 0x252   :  { %681 = vrot.lane.b32.xlu0 %v669_v50, %s1685_s14  ;;  %v1473_v58 = vpop.f32.mrb[5].mxu0  ;;  %v675_v60 = vadd.f32 %v674_v59, %v669_v50 }
 0x254   :  { %1625 = vtanh.f32 %v675_v60 }
 0x25e   :  { %v1626_v1 = vpop.eup %1625 }
 0x25f   :  { %v677_v2 = vadd.f32 1.0, %v1626_v1 }
 0x261   :  { %v695_v3 = vmul.f32 %v677_v2, %v598_v57 }
 0x263   :  { %v696_v6 = vadd.f32 %v695_v3, %v694_v5 }
 0x2c4   :  { %v682_v62 = vpop.permute.xlu0 %681 }
 0x2c5   :  { %v684_v63 = vadd.f32 %v682_v62, %v679_v61  ;;  %v980_v62 = vld [vmem:[#allocation2 + $0x8] sm:$0x3] }
 0x2c7   :  { %v1341_v0 = vmul.f32 -1.442695, %v684_v63 }
 0x2c9   :  { %1627 = vpow2.f32 %v1341_v0  ;;  %v985_v0 = vld [vmem:[#allocation3 + $0x8] sm:$0x3] }
 0x2d3   :  { %v1628_v4 = vpop.eup %1627 }
 0x2d4   :  { %v688_v7 = vadd.f32 1.0, %v1628_v4 }
 0x2d6   :  { %1629 = vrcp.f32 %v688_v7 }
 0x2d7   :  { %1631 = vtanh.f32 %v696_v6 }
 0x2e0   :  { %v1630_v8 = vpop.eup %1629 }
 0x2e1   :  { %v692_v9 = vsub.f32 1.0, %v1630_v8  ;;  %v1632_v10 = vpop.eup %1631  ;;  %v691_v12 = vmul.f32 %v1630_v8, %v598_v57  ;;  %v1000_v8 = vld [vmem:[#allocation4 + $0x8] sm:$0x3] }
 0x2e3   :  { %v698_v13 = vmul.f32 %v1632_v10, %v692_v9 }
 0x2e5   :  { %v699_v14 = vadd.f32 %v698_v13, %v691_v12 }
 0x2e7   :  { %1342 = vst.msk [vmem:[%s1952_s4 + $0x2] sm:$0x3] %vm21_vm0, %v699_v14  ;;  %1483 = vmatmul.mubr.msk.f32.vlgmr.msra.gmra.mrb[4].mxu1 %vm84_vm1, %v699_v14 }
 0x2e8   :  { %1590 = vmatpush3.bf16.msra.mxu1 %v1785_v43  ;;  %1504 = vmatprep.mubr.msk.f32.mxu1 %vm1684_vm2, %v1682_v11 }
 0x2e9   :  { %1591 = vmatprep.subr.bf16.mxu1 %v1683_v47 }
 0x2ec   :  { %1593 = vmatpush3.bf16.msra.mxu1 %v1799_v49 }
 0x2ed   :  { %1600 = vmatprep.subr.bf16.mxu1 %v1683_v47 }
 0x3ba   :  { %v771_v15 = vpop.f32.mrb[4].mxu1 }
 0x3bb   :  { %783 = vrot.lane.b32.xlu1 %v771_v15, %s1685_s14  ;;  %v1484_v16 = vpop.f32.mrb[5].mxu1  ;;  %v777_v18 = vadd.f32 %v776_v17, %v771_v15 }
 0x3bd   :  { %1633 = vtanh.f32 %v777_v18 }
 0x3c7   :  { %v1634_v23 = vpop.eup %1633 }
 0x3c8   :  { %v779_v25 = vadd.f32 1.0, %v1634_v23 }
 0x3ca   :  { %v797_v26 = vmul.f32 %v779_v25, %v699_v14 }
 0x3cc   :  { %v798_v29 = vadd.f32 %v797_v26, %v796_v28 }
 0x42d   :  { %v784_v20 = vpop.permute.xlu1 %783 }
 0x42e   :  { %v786_v21 = vadd.f32 %v784_v20, %v781_v19  ;;  %v1082_v20 = vld [vmem:[#allocation2 + $0xa] sm:$0x3] }
 0x430   :  { %v1344_v22 = vmul.f32 -1.442695, %v786_v21 }
 0x432   :  { %1635 = vpow2.f32 %v1344_v22  ;;  %v1087_v22 = vld [vmem:[#allocation3 + $0xa] sm:$0x3] }
 0x43c   :  { %v1636_v27 = vpop.eup %1635 }
 0x43d   :  { %v790_v30 = vadd.f32 1.0, %v1636_v27 }
 0x43f   :  { %1637 = vrcp.f32 %v790_v30 }
 0x440   :  { %1639 = vtanh.f32 %v798_v29  ;;  %v1102_v29 = vld [vmem:[#allocation4 + $0xa] sm:$0x3] }
 0x449   :  { %v1638_v31 = vpop.eup %1637 }
 0x44a   :  { %v794_v32 = vsub.f32 1.0, %v1638_v31  ;;  %v1640_v33 = vpop.eup %1639  ;;  %v793_v34 = vmul.f32 %v1638_v31, %v699_v14 }
 0x44c   :  { %v800_v35 = vmul.f32 %v1640_v33, %v794_v32 }
 0x44e   :  { %v801_v36 = vadd.f32 %v800_v35, %v793_v34 }
 0x450   :  { %1345 = vst.msk [vmem:[%s1952_s4 + $0x4] sm:$0x3] %vm21_vm0, %v801_v36  ;;  %1494 = vmatmul.mubr.msk.f32.vlgmr.msra.gmra.mrb[6].mxu0 %vm84_vm1, %v801_v36 }
 0x451   :  { %1596 = vmatpush3.bf16.msra.mxu0 %v1785_v43  ;;  %1515 = vmatprep.mubr.msk.f32.mxu0 %vm1684_vm2, %v1682_v11 }
 0x452   :  { %1597 = vmatprep.subr.bf16.mxu0 %v1683_v47 }
 0x455   :  { %1599 = vmatpush3.bf16.msra.mxu0 %v1799_v49 }
 0x456   :  { %1606 = vmatprep.subr.bf16.mxu0 %v1683_v47 }
 0x523   :  { %v873_v37 = vpop.f32.mrb[6].mxu0 }
 0x524   :  { %885 = vrot.lane.b32.xlu1 %v873_v37, %s1685_s14  ;;  %v1495_v24 = vpop.f32.mrb[7].mxu0  ;;  %v879_v39 = vadd.f32 %v878_v38, %v873_v37 }
 0x525   :  { %v1184_v24 = vld [vmem:[#allocation2 + $0xc] sm:$0x3] }
 0x526   :  { %1641 = vtanh.f32 %v879_v39  ;;  %v1189_v39 = vld [vmem:[#allocation3 + $0xc] sm:$0x3] }
 0x530   :  { %v1642_v45 = vpop.eup %1641 }
 0x531   :  { %v881_v46 = vadd.f32 1.0, %v1642_v45 }
 0x533   :  { %v899_v48 = vmul.f32 %v881_v46, %v801_v36 }
 0x535   :  { %v900_v53 = vadd.f32 %v899_v48, %v898_v52 }
 0x596   :  { %v886_v41 = vpop.permute.xlu1 %885 }
 0x597   :  { %v888_v42 = vadd.f32 %v886_v41, %v883_v40 }
 0x599   :  { %v1347_v44 = vmul.f32 -1.442695, %v888_v42 }
 0x59b   :  { %1643 = vpow2.f32 %v1347_v44 }
 0x5a5   :  { %v1644_v51 = vpop.eup %1643 }
 0x5a6   :  { %v892_v54 = vadd.f32 1.0, %v1644_v51  ;;  %v1204_v51 = vld [vmem:[#allocation4 + $0xc] sm:$0x3] }
 0x5a8   :  { %1645 = vrcp.f32 %v892_v54 }
 0x5a9   :  { %1647 = vtanh.f32 %v900_v53 }
 0x5b2   :  { %v1646_v55 = vpop.eup %1645 }
 0x5b3   :  { %v896_v56 = vsub.f32 1.0, %v1646_v55  ;;  %v1648_v57 = vpop.eup %1647  ;;  %v895_v50 = vmul.f32 %v1646_v55, %v801_v36 }
 0x5b5   :  { %v902_v58 = vmul.f32 %v1648_v57, %v896_v56 }
 0x5b7   :  { %v903_v59 = vadd.f32 %v902_v58, %v895_v50 }
 0x5b9   :  { %1348 = vst.msk [vmem:[%s1952_s4 + $0x6] sm:$0x3] %vm21_vm0, %v903_v59  ;;  %1505 = vmatmul.mubr.msk.f32.vlgmr.msra.gmra.mrb[6].mxu1 %vm84_vm1, %v903_v59 }
 0x5ba   :  { %1602 = vmatpush3.bf16.msra.mxu1 %v1785_v43  ;;  %1526 = vmatprep.mubr.msk.f32.mxu1 %vm1684_vm2, %v1682_v11 }
 0x5bb   :  { %1603 = vmatprep.subr.bf16.mxu1 %v1683_v47 }
 0x5be   :  { %1605 = vmatpush3.bf16.msra.mxu1 %v1799_v49 }
 0x68c   :  { %v975_v60 = vpop.f32.mrb[6].mxu1 }
 0x68d   :  { %987 = vrot.lane.b32.xlu0 %v975_v60, %s1685_s14  ;;  %v1506_v61 = vpop.f32.mrb[7].mxu1  ;;  %v981_v63 = vadd.f32 %v980_v62, %v975_v60 }
 0x68e   :  { %v1286_v61 = vld [vmem:[#allocation2 + $0xe] sm:$0x3] }
 0x68f   :  { %1649 = vtanh.f32 %v981_v63  ;;  %v1291_v63 = vld [vmem:[#allocation3 + $0xe] sm:$0x3] }
 0x699   :  { %v1650_v4 = vpop.eup %1649 }
 0x69a   :  { %v983_v5 = vadd.f32 1.0, %v1650_v4 }
 0x69c   :  { %v1001_v6 = vmul.f32 %v983_v5, %v903_v59 }
 0x69e   :  { %v1002_v9 = vadd.f32 %v1001_v6, %v1000_v8 }
 0x6ff   :  { %v988_v1 = vpop.permute.xlu0 %987 }
 0x700   :  { %v990_v2 = vadd.f32 %v988_v1, %v985_v0 }
 0x702   :  { %v1350_v3 = vmul.f32 -1.442695, %v990_v2 }
 0x704   :  { %1651 = vpow2.f32 %v1350_v3 }
 0x70e   :  { %v1652_v7 = vpop.eup %1651 }
 0x70f   :  { %v994_v10 = vadd.f32 1.0, %v1652_v7  ;;  %v1306_v7 = vld [vmem:[#allocation4 + $0xe] sm:$0x3] }
 0x711   :  { %1653 = vrcp.f32 %v994_v10 }
 0x712   :  { %1655 = vtanh.f32 %v1002_v9 }
 0x71b   :  { %v1654_v12 = vpop.eup %1653 }
 0x71c   :  { %v998_v13 = vsub.f32 1.0, %v1654_v12  ;;  %v1656_v14 = vpop.eup %1655  ;;  %v997_v15 = vmul.f32 %v1654_v12, %v903_v59 }
 0x71e   :  { %v1004_v16 = vmul.f32 %v1656_v14, %v998_v13 }
 0x720   :  { %v1005_v17 = vadd.f32 %v1004_v16, %v997_v15 }
 0x722   :  { %1351 = vst.msk [vmem:[%s1952_s4 + $0x8] sm:$0x3] %vm21_vm0, %v1005_v17  ;;  %1516 = vmatmul.mubr.msk.f32.vlgmr.msra.gmra.mrb[8].mxu0 %vm84_vm1, %v1005_v17 }
 0x723   :  { %1608 = vmatpush3.bf16.msra.mxu0 %v1785_v43  ;;  %1537 = vmatprep.mubr.msk.f32.mxu0 %vm1684_vm2, %v1682_v11 }
 0x724   :  { %1609 = vmatprep.subr.bf16.mxu0 %v1683_v47 }
 0x727   :  { %1611 = vmatpush3.bf16.msra.mxu0 %v1799_v49 }
 0x7f5   :  { %v1077_v18 = vpop.f32.mrb[8].mxu0 }
 0x7f6   :  { %1089 = vrot.lane.b32.xlu1 %v1077_v18, %s1685_s14  ;;  %v1517_v19 = vpop.f32.mrb[9].mxu0  ;;  %v1083_v21 = vadd.f32 %v1082_v20, %v1077_v18 }
 0x7f8   :  { %1657 = vtanh.f32 %v1083_v21 }
 0x802   :  { %v1658_v27 = vpop.eup %1657 }
 0x803   :  { %v1085_v43 = vadd.f32 1.0, %v1658_v27 }
 0x805   :  { %v1103_v28 = vmul.f32 %v1085_v43, %v1005_v17 }
 0x807   :  { %v1104_v47 = vadd.f32 %v1103_v28, %v1102_v29 }
 0x868   :  { %v1090_v23 = vpop.permute.xlu1 %1089 }
 0x869   :  { %v1092_v25 = vadd.f32 %v1090_v23, %v1087_v22 }
 0x86b   :  { %v1353_v26 = vmul.f32 -1.442695, %v1092_v25 }
 0x86d   :  { %1659 = vpow2.f32 %v1353_v26 }
 0x877   :  { %v1660_v11 = vpop.eup %1659 }
 0x878   :  { %v1096_v30 = vadd.f32 1.0, %v1660_v11 }
 0x87a   :  { %1661 = vrcp.f32 %v1096_v30 }
 0x87b   :  { %1663 = vtanh.f32 %v1104_v47 }
 0x884   :  { %v1662_v49 = vpop.eup %1661 }
 0x885   :  { %v1100_v31 = vsub.f32 1.0, %v1662_v49  ;;  %v1664_v32 = vpop.eup %1663  ;;  %v1099_v33 = vmul.f32 %v1662_v49, %v1005_v17 }
 0x887   :  { %v1106_v34 = vmul.f32 %v1664_v32, %v1100_v31 }
 0x889   :  { %v1107_v35 = vadd.f32 %v1106_v34, %v1099_v33 }
 0x88b   :  { %1354 = vst.msk [vmem:[%s1952_s4 + $0xa] sm:$0x3] %vm21_vm0, %v1107_v35  ;;  %1527 = vmatmul.mubr.msk.f32.vlgmr.msra.gmra.mrb[8].mxu1 %vm84_vm1, %v1107_v35 }
 0x95e   :  { %v1179_v36 = vpop.f32.mrb[8].mxu1 }
 0x95f   :  { %1191 = vrot.lane.b32.xlu0 %v1179_v36, %s1685_s14  ;;  %v1528_v37 = vpop.f32.mrb[9].mxu1  ;;  %v1185_v38 = vadd.f32 %v1184_v24, %v1179_v36 }
 0x961   :  { %1665 = vtanh.f32 %v1185_v38 }
 0x96b   :  { %v1666_v44 = vpop.eup %1665 }
 0x96c   :  { %v1187_v45 = vadd.f32 1.0, %v1666_v44 }
 0x96e   :  { %v1205_v46 = vmul.f32 %v1187_v45, %v1107_v35 }
 0x970   :  { %v1206_v52 = vadd.f32 %v1205_v46, %v1204_v51 }
 0x9d1   :  { %v1192_v40 = vpop.permute.xlu0 %1191 }
 0x9d2   :  { %v1194_v41 = vadd.f32 %v1192_v40, %v1189_v39 }
 0x9d4   :  { %v1356_v42 = vmul.f32 -1.442695, %v1194_v41 }
 0x9d6   :  { %1667 = vpow2.f32 %v1356_v42 }
 0x9e0   :  { %v1668_v48 = vpop.eup %1667 }
 0x9e1   :  { %v1198_v53 = vadd.f32 1.0, %v1668_v48 }
 0x9e3   :  { %1669 = vrcp.f32 %v1198_v53 }
 0x9e4   :  { %1671 = vtanh.f32 %v1206_v52 }
 0x9ed   :  { %v1670_v54 = vpop.eup %1669 }
 0x9ee   :  { %v1202_v55 = vsub.f32 1.0, %v1670_v54  ;;  %v1672_v56 = vpop.eup %1671  ;;  %v1201_v57 = vmul.f32 %v1670_v54, %v1107_v35 }
 0x9f0   :  { %v1208_v50 = vmul.f32 %v1672_v56, %v1202_v55 }
 0x9f2   :  { %v1209_v58 = vadd.f32 %v1208_v50, %v1201_v57 }
 0x9f4   :  { %1357 = vst.msk [vmem:[%s1952_s4 + $0xc] sm:$0x3] %vm21_vm0, %v1209_v58  ;;  %1538 = vmatmul.mubr.msk.f32.vlgmr.msra.gmra.mrb[10].mxu0 %vm84_vm1, %v1209_v58 }
 0xac7   :  { %v1281_v59 = vpop.f32.mrb[10].mxu0 }
 0xac8   :  { %1293 = vrot.lane.b32.xlu1 %v1281_v59, %s1685_s14  ;;  %v1539_v60 = vpop.f32.mrb[11].mxu0  ;;  %v1287_v62 = vadd.f32 %v1286_v61, %v1281_v59 }
 0xaca   :  { %1673 = vtanh.f32 %v1287_v62 }
 0xad4   :  { %v1674_v3 = vpop.eup %1673 }
 0xad5   :  { %v1289_v4 = vadd.f32 1.0, %v1674_v3 }
 0xad7   :  { %v1307_v5 = vmul.f32 %v1289_v4, %v1209_v58 }
 0xad9   :  { %v1308_v8 = vadd.f32 %v1307_v5, %v1306_v7 }
 0xb3a   :  { %v1294_v0 = vpop.permute.xlu1 %1293 }
 0xb3b   :  { %v1296_v1 = vadd.f32 %v1294_v0, %v1291_v63 }
 0xb3d   :  { %v1359_v2 = vmul.f32 -1.442695, %v1296_v1 }
 0xb3f   :  { %1675 = vpow2.f32 %v1359_v2 }
 0xb49   :  { %v1676_v6 = vpop.eup %1675 }
 0xb4a   :  { %v1300_v9 = vadd.f32 1.0, %v1676_v6 }
 0xb4c   :  { %1677 = vrcp.f32 %v1300_v9 }
 0xb4d   :  { %1679 = vtanh.f32 %v1308_v8 }
 0xb56   :  { %v1678_v10 = vpop.eup %1677 }
 0xb57   :  { %v1304_v12 = vsub.f32 1.0, %v1678_v10  ;;  %v1680_v13 = vpop.eup %1679  ;;  %v1303_v14 = vmul.f32 %v1678_v10, %v1209_v58 }
 0xb59   :  { %v1310_v15 = vmul.f32 %v1680_v13, %v1304_v12 }
 0xb5b   :  { %v1311_v16 = vadd.f32 %v1310_v15, %v1303_v14 }
 0xb5d   :  { %1360 = vst.msk [vmem:[%s1952_s4 + $0xe] sm:$0x3] %vm21_vm0, %v1311_v16  ;;  %1314 = vst.msk [vmem:[#allocation5] sm:$0x3] %vm21_vm0, %v1311_v16 }

</bundles_post_ra>
